<compile_context>
chip_gen: v5e
topology: v5e:2x2
jax: 0.10.0
libtpu: 0.0.40
codegen_flags: <defaults>
</compile_context>

<pallas_src>
import functools

import jax
import jax.numpy as jnp
from jax import lax
from jax.experimental import pallas as pl
from jax.experimental.pallas import tpu as pltpu

EPS = 1e-5
LANE = 128  # lane-dense channel padding


def _round_up(x, m):
    return (x + m - 1) // m * m


def _chan_pad(a, cp):
    extra = cp - a.shape[-1]
    if extra == 0:
        return a
    return jnp.pad(a, [(0, 0)] * (a.ndim - 1) + [(0, extra)])


def _default_vmem_limit():
    """Generation-aware scoped-VMEM limit (v5e/v6e: 128 MiB phys, v7x: 64 MiB)."""
    cap = 64 * 1024 * 1024
    try:
        info = pltpu.get_tpu_info()
        cap = int(getattr(info, "vmem_capacity_bytes", cap))
    except Exception:
        pass
    return max(32 * 1024 * 1024, min(100 * 1024 * 1024, (cap * 3) // 4))


def _conv_vmem_bytes(th, w, cpi, cpo, in_isz, y_isz):
    slab = th * w * 9 * cpi * in_isz              # im2col scratch (single buffer)
    x_in = 2 * (th + 2) * (w + 2) * cpi * in_isz  # double-buffered halo tile
    wts = 2 * 9 * cpi * cpo * in_isz              # weight block
    y_o = 2 * th * w * cpo * y_isz                # double-buffered conv output
    acc = 2 * th * w * cpo * 4                    # f32 matmul result + temps
    return slab + x_in + wts + y_o + acc


def _pick_tile_h(h, w, cpi, cpo, in_isz, y_isz, budget):
    """Largest divisor of H whose conv working set fits the per-step budget."""
    # TODO(synk): for W % 8 != 0 (ResNet stages with W=14/7) the in-kernel
    #             (TH, W, C) <-> (TH*W, C) reshapes relayout; prefer W-aligned
    #             shapes or accept the extra in-VMEM copy.
    best = 1
    for th in range(1, h + 1):
        if h % th:
            continue
        if _conv_vmem_bytes(th, w, cpi, cpo, in_isz, y_isz) <= budget:
            best = th
    return best


# --------------------------------------------------------------------------- #
# Kernel 1: implicit-im2col 3x3 conv (stride 1, pad 1) + BN partial stats.
# Input is a per-tile halo block (1, TH+2, W+2, Cpi); weights are pre-flattened
# to (9*Cpi, Cpo) so all nine taps are contracted in one MXU matmul.
# --------------------------------------------------------------------------- #
def _conv3x3_kernel(x_ref, w_ref, y_ref, part_ref, slab_ref):
    th, wd, cpo = y_ref.shape[1], y_ref.shape[2], y_ref.shape[3]
    cpi = x_ref.shape[3]

    # Each tap is copied exactly once into the im2col slab (lane-tile-aligned
    # destination); the 9-tap accumulation then happens inside the MXU.
    for dy in range(3):
        for dx in range(3):
            tap = dy * 3 + dx
            patch = x_ref[0, dy:dy + th, dx:dx + wd, :]          # (TH, W, Cpi)
            slab_ref[:, tap * cpi:(tap + 1) * cpi] = patch.reshape(th * wd, cpi)

    acc = jnp.dot(slab_ref[...], w_ref[...],
                  preferred_element_type=jnp.float32)            # (TH*W, Cpo)
    y_ref[0] = acc.reshape(th, wd, cpo).astype(y_ref.dtype)

    # Per-tile BN partials: sum and *centered* M2 (combined with the parallel
    # variance formula outside the kernel -> no E[y^2]-E[y]^2 cancellation).
    inv_cnt = 1.0 / float(th * wd)
    tsum = jnp.sum(acc, axis=0, keepdims=True)                   # (1, Cpo)
    diff = acc - tsum * inv_cnt
    m2 = jnp.sum(diff * diff, axis=0, keepdims=True)             # (1, Cpo)
    part_ref[0, 0:1, :] = tsum
    part_ref[0, 1:2, :] = m2


def _conv3x3(x_tiles, w_flat, y_dtype, vmem_limit):
    nt, thp2, wp2, cpi = x_tiles.shape
    th, w = thp2 - 2, wp2 - 2
    cpo = w_flat.shape[-1]
    assert w_flat.shape[0] == 9 * cpi
    in_isz = x_tiles.dtype.itemsize
    y_isz = jnp.dtype(y_dtype).itemsize

    flops = 2 * nt * th * w * 9 * cpi * cpo
    bytes_accessed = int(x_tiles.size * in_isz + w_flat.size * in_isz
                         + nt * th * w * cpo * y_isz + nt * 2 * cpo * 4)

    return pl.pallas_call(
        _conv3x3_kernel,
        grid=(nt,),
        in_specs=[
            pl.BlockSpec((1, thp2, wp2, cpi), lambda g: (g, 0, 0, 0)),
            pl.BlockSpec((9 * cpi, cpo), lambda g: (0, 0)),
        ],
        out_specs=[
            pl.BlockSpec((1, th, w, cpo), lambda g: (g, 0, 0, 0)),
            pl.BlockSpec((1, 2, cpo), lambda g: (g, 0, 0)),
        ],
        out_shape=[
            jax.ShapeDtypeStruct((nt, th, w, cpo), y_dtype),
            jax.ShapeDtypeStruct((nt, 2, cpo), jnp.float32),
        ],
        scratch_shapes=[pltpu.VMEM((th * w, 9 * cpi), x_tiles.dtype)],
        compiler_params=pltpu.CompilerParams(
            dimension_semantics=("parallel",),
            vmem_limit_bytes=vmem_limit),
        cost_estimate=pl.CostEstimate(flops=flops, transcendentals=0,
                                      bytes_accessed=bytes_accessed),
    )(x_tiles, w_flat)


# --------------------------------------------------------------------------- #
# Kernel 2a: BN apply + ReLU, written straight into zero-bordered halo tiles
# (NT, TH+2, W+2, C) so the next conv needs no HBM re-pad.  Halo rows come from
# the neighbouring tiles via clamped single-row BlockSpecs and are zeroed at
# sample edges in-kernel.
# --------------------------------------------------------------------------- #
def _bn_relu_pad_kernel(nb, yb_ref, yt_ref, yd_ref, s_ref, b_ref, o_ref):
    g = pl.program_id(0)
    th, wd = yb_ref.shape[1], yb_ref.shape[2]
    s = s_ref[0]
    b = b_ref[0]

    o_ref[...] = jnp.zeros(o_ref.shape, o_ref.dtype)   # zero spatial borders

    body = jnp.maximum(yb_ref[0].astype(jnp.float32) * s + b, 0.0)
    o_ref[0, 1:th + 1, 1:wd + 1, :] = body.astype(o_ref.dtype)

    top = jnp.maximum(yt_ref[0].astype(jnp.float32) * s + b, 0.0)
    top = jnp.where(g % nb == 0, 0.0, top)             # first tile of a sample
    o_ref[0, 0:1, 1:wd + 1, :] = top.astype(o_ref.dtype)

    bot = jnp.maximum(yd_ref[0].astype(jnp.float32) * s + b, 0.0)
    bot = jnp.where(g % nb == nb - 1, 0.0, bot)        # last tile of a sample
    o_ref[0, th + 1:th + 2, 1:wd + 1, :] = bot.astype(o_ref.dtype)


def _bn_relu_to_halo_tiles(y, scale, shift, nb, out_dtype, vmem_limit):
    nt, th, w, cpo = y.shape
    y_isz = y.dtype.itemsize
    o_isz = jnp.dtype(out_dtype).itemsize
    bytes_accessed = int(y.size * y_isz + 2 * nt * w * cpo * y_isz
                         + nt * (th + 2) * (w + 2) * cpo * o_isz)
    kernel = functools.partial(_bn_relu_pad_kernel, nb)

    return pl.pallas_call(
        kernel,
        grid=(nt,),
        in_specs=[
            pl.BlockSpec((1, th, w, cpo), lambda g: (g, 0, 0, 0)),
            # row above this tile (clamped; zeroed in-kernel at sample edge)
            pl.BlockSpec((1, 1, w, cpo),
                         lambda g: (jnp.maximum(g - 1, 0), th - 1, 0, 0)),
            # row below this tile (clamped; zeroed in-kernel at sample edge)
            pl.BlockSpec((1, 1, w, cpo),
                         lambda g: (jnp.minimum(g + 1, nt - 1), 0, 0, 0)),
            pl.BlockSpec((1, cpo), lambda g: (0, 0)),
            pl.BlockSpec((1, cpo), lambda g: (0, 0)),
        ],
        out_specs=pl.BlockSpec((1, th + 2, w + 2, cpo), lambda g: (g, 0, 0, 0)),
        out_shape=jax.ShapeDtypeStruct((nt, th + 2, w + 2, cpo), out_dtype),
        compiler_params=pltpu.CompilerParams(
            dimension_semantics=("parallel",),
            vmem_limit_bytes=vmem_limit),
        cost_estimate=pl.CostEstimate(flops=3 * nt * th * w * cpo,
                                      transcendentals=0,
                                      bytes_accessed=bytes_accessed),
    )(y, y, y, scale, shift)


# --------------------------------------------------------------------------- #
# Kernel 2b: final BN apply + residual + ReLU.  The residual is read from the
# interior of the x halo tiles (no separate residual copy/cast in HBM).
# --------------------------------------------------------------------------- #
def _bn_add_relu_kernel(y_ref, s_ref, b_ref, x_ref, o_ref):
    th, wd = y_ref.shape[1], y_ref.shape[2]
    res = x_ref[0, 1:th + 1, 1:wd + 1, :].astype(jnp.float32)
    o = y_ref[0].astype(jnp.float32) * s_ref[0] + b_ref[0] + res
    o_ref[0] = jnp.maximum(o, 0.0).astype(o_ref.dtype)


def _bn_add_relu(y, scale, shift, x_tiles, vmem_limit):
    nt, th, w, cpo = y.shape
    thp2, wp2, cpi = x_tiles.shape[1], x_tiles.shape[2], x_tiles.shape[3]
    assert cpi == cpo and thp2 == th + 2 and wp2 == w + 2
    bytes_accessed = int(y.size * y.dtype.itemsize
                         + x_tiles.size * x_tiles.dtype.itemsize
                         + nt * th * w * cpo * 4)

    return pl.pallas_call(
        _bn_add_relu_kernel,
        grid=(nt,),
        in_specs=[
            pl.BlockSpec((1, th, w, cpo), lambda g: (g, 0, 0, 0)),
            pl.BlockSpec((1, cpo), lambda g: (0, 0)),
            pl.BlockSpec((1, cpo), lambda g: (0, 0)),
            pl.BlockSpec((1, thp2, wp2, cpi), lambda g: (g, 0, 0, 0)),
        ],
        out_specs=pl.BlockSpec((1, th, w, cpo), lambda g: (g, 0, 0, 0)),
        out_shape=jax.ShapeDtypeStruct((nt, th, w, cpo), jnp.float32),
        compiler_params=pltpu.CompilerParams(
            dimension_semantics=("parallel",),
            vmem_limit_bytes=vmem_limit),
        cost_estimate=pl.CostEstimate(flops=4 * nt * th * w * cpo,
                                      transcendentals=0,
                                      bytes_accessed=bytes_accessed),
    )(y, scale, shift, x_tiles)


# --------------------------------------------------------------------------- #
# JAX glue.
# --------------------------------------------------------------------------- #
def _bn_scale_shift(parts, gamma_p, beta_p, tile_count, total_count):
    """Combine per-tile (sum, centered M2) partials -> BN scale/shift."""
    tsum = parts[:, 0, :]                                   # (NT, Cpo)
    m2 = parts[:, 1, :]
    gmean = jnp.sum(tsum, axis=0) / total_count
    tmean = tsum / tile_count
    m2_tot = jnp.sum(m2, axis=0) + tile_count * jnp.sum((tmean - gmean) ** 2,
                                                        axis=0)
    var = jnp.maximum(m2_tot / total_count, 0.0)
    inv_std = lax.rsqrt(var + EPS)
    scale = gamma_p * inv_std
    shift = beta_p - gmean * scale
    return (scale.reshape(1, -1).astype(jnp.float32),
            shift.reshape(1, -1).astype(jnp.float32))


def basic_block_forward_nhwc(x_nhwc, params, *, compute_dtype=jnp.bfloat16,
                             tile_h=None):
    """BasicBlock.forward (stride=1, downsample=None) on NHWC input."""
    n, h, w, c = x_nhwc.shape
    planes = params["w1"].shape[-1]
    assert params["w1"].shape[:3] == (3, 3, c)
    assert planes == c and params["w2"].shape == (3, 3, planes, planes)

    cpi = _round_up(c, LANE)
    cpo = _round_up(planes, LANE)
    in_isz = jnp.dtype(compute_dtype).itemsize
    vmem_limit = _default_vmem_limit()
    if tile_h is None:
        tile_h = _pick_tile_h(h, w, cpi, cpo, in_isz, in_isz, vmem_limit // 2)
    assert h % tile_h == 0, "tile_h must divide H"
    nb = h // tile_h
    nt = n * nb

    # One channel-padded, spatially padded copy of x, cut into overlapping
    # (TH+2)-row halo tiles.  The same array also supplies the residual.
    x_cp = _chan_pad(x_nhwc.astype(jnp.float32), cpi)
    x_pad = jnp.pad(x_cp, ((0, 0), (1, 1), (1, 1), (0, 0))).astype(compute_dtype)
    x_tiles = jnp.stack([x_pad[:, i * tile_h:i * tile_h + tile_h + 2]
                         for i in range(nb)], axis=1)
    x_tiles = x_tiles.reshape(nt, tile_h + 2, w + 2, cpi)

    def pad_weight(w_hwio):
        wp = jnp.pad(w_hwio, ((0, 0), (0, 0),
                              (0, cpi - w_hwio.shape[2]),
                              (0, cpo - w_hwio.shape[3])))
        return wp.reshape(9 * cpi, cpo).astype(compute_dtype)

    w1p = pad_weight(params["w1"])
    w2p = pad_weight(params["w2"])
    g1p = _chan_pad(params["g1"].astype(jnp.float32), cpo)
    b1p = _chan_pad(params["b1"].astype(jnp.float32), cpo)
    g2p = _chan_pad(params["g2"].astype(jnp.float32), cpo)
    b2p = _chan_pad(params["b2"].astype(jnp.float32), cpo)

    tile_count = float(tile_h * w)
    total_count = float(n * h * w)

    # stage 1: conv1 -> bn1 -> relu  (output lands directly in halo tiles)
    y1, p1 = _conv3x3(x_tiles, w1p, compute_dtype, vmem_limit)
    s1, t1 = _bn_scale_shift(p1, g1p, b1p, tile_count, total_count)
    a1_tiles = _bn_relu_to_halo_tiles(y1, s1, t1, nb, compute_dtype, vmem_limit)

    # stage 2: conv2 -> bn2 -> +residual -> relu
    y2, p2 = _conv3x3(a1_tiles, w2p, compute_dtype, vmem_limit)
    s2, t2 = _bn_scale_shift(p2, g2p, b2p, tile_count, total_count)
    out = _bn_add_relu(y2, s2, t2, x_tiles, vmem_limit)

    out = out.reshape(n, h, w, cpo)
    return out[..., :planes]


def basic_block_forward(x_nchw, params, *, compute_dtype=jnp.bfloat16,
                        tile_h=None):
    # NCHW <-> NHWC transposes kept only for parity with the PyTorch module;
    # production callers should use basic_block_forward_nhwc end to end.
    x = jnp.transpose(x_nchw, (0, 2, 3, 1))
    out = basic_block_forward_nhwc(x, params, compute_dtype=compute_dtype,
                                   tile_h=tile_h)
    return jnp.transpose(out, (0, 3, 1, 2))


# --------------------------------------------------------------------------- #
# Pure-JAX reference (training-mode BatchNorm, stride=1, downsample=None).
# --------------------------------------------------------------------------- #
def ref_forward(x_nchw, params):
    def conv(x, w_hwio):
        w_oihw = jnp.transpose(w_hwio, (3, 2, 0, 1))
        return lax.conv_general_dilated(
            x, w_oihw, window_strides=(1, 1), padding="SAME",
            dimension_numbers=("NCHW", "OIHW", "NCHW"),
            precision=lax.Precision.HIGHEST)

    def bn(x, g, b):
        mean = jnp.mean(x, axis=(0, 2, 3), keepdims=True)
        var = jnp.mean((x - mean) ** 2, axis=(0, 2, 3), keepdims=True)
        xh = (x - mean) * lax.rsqrt(var + EPS)
        return xh * g.reshape(1, -1, 1, 1) + b.reshape(1, -1, 1, 1)

    out = jax.nn.relu(bn(conv(x_nchw, params["w1"]), params["g1"], params["b1"]))
    out = bn(conv(out, params["w2"]), params["g2"], params["b2"])
    return jax.nn.relu(out + x_nchw)


# --------------------------------------------------------------------------- #
if __name__ == "__main__":
    key = jax.random.PRNGKey(0)
    k_x, k_w1, k_w2, k_g1, k_b1, k_g2, k_b2 = jax.random.split(key, 7)

    n, c, h, w = 2, 4, 16, 16          # inplanes = planes = 4, stride = 1
    planes = c

    x = jax.random.normal(k_x, (n, c, h, w), jnp.float32)
    params = {
        "w1": 0.1 * jax.random.normal(k_w1, (3, 3, c, planes), jnp.float32),
        "w2": 0.1 * jax.random.normal(k_w2, (3, 3, planes, planes), jnp.float32),
        "g1": 1.0 + 0.1 * jax.random.normal(k_g1, (planes,), jnp.float32),
        "b1": 0.1 * jax.random.normal(k_b1, (planes,), jnp.float32),
        "g2": 1.0 + 0.1 * jax.random.normal(k_g2, (planes,), jnp.float32),
        "b2": 0.1 * jax.random.normal(k_b2, (planes,), jnp.float32),
    }

    ref = jax.block_until_ready(ref_forward(x, params))

    # f32 compute path with an explicit multi-tile split (exercises the
    # cross-tile halo logic): tight numerical gate vs the pure-JAX reference.
    fwd_f32 = jax.jit(functools.partial(basic_block_forward,
                                        compute_dtype=jnp.float32, tile_h=8))
    out_f32 = jax.block_until_ready(fwd_f32(x, params))
    assert out_f32.shape == (n, planes, h, w)
    err32 = float(jnp.max(jnp.abs(out_f32 - ref)))
    assert err32 < 5e-3, f"f32 path max abs err {err32}"

    # bf16 perf path (auto tile_h from the generation-aware VMEM budget):
    # sanity gate (residual and intermediates deliberately rounded to bf16).
    fwd_bf16 = jax.jit(functools.partial(basic_block_forward,
                                         compute_dtype=jnp.bfloat16))
    out_bf16 = jax.block_until_ready(fwd_bf16(x, params))
    errbf = float(jnp.max(jnp.abs(out_bf16 - ref)))
    assert errbf < 1e-1, f"bf16 path max abs err {errbf}"

    print("KERNEL_OK")
</pallas_src>

<mosaic_0001>
module attributes {stable_mosaic.version = 11 : i64} {
  func.func @_conv3x3_kernel(%arg0: i32, %arg1: memref<1x10x18x128xf32, #tpu.memory_space<vmem>>, %arg2: memref<1152x128xf32, #tpu.memory_space<vmem>>, %arg3: memref<1x8x16x128xf32, #tpu.memory_space<vmem>>, %arg4: memref<1x2x128xf32, #tpu.memory_space<vmem>>, %arg5: memref<128x1152xf32, #tpu.memory_space<vmem>>) attributes {dimension_semantics = [#tpu.dimension_semantics<parallel>], iteration_bounds = array<i64: 4>, scalar_prefetch = 0 : i64, scratch_operands = 1 : i64, tpu.core_type = #tpu.core_type<tc>, window_params = [{transform_indices = @transform_0, window_bounds = array<i64: 1, 10, 18, 128>}, {pipeline_mode = #tpu.pipeline_mode<synchronous>, transform_indices = @transform_1, window_bounds = array<i64: 1152, 128>}, {transform_indices = @transform_2, window_bounds = array<i64: 1, 8, 16, 128>}, {transform_indices = @transform_3, window_bounds = array<i64: 1, 2, 128>}]} {
    %c0 = arith.constant 0 : index
    %c0_0 = arith.constant 0 : index
    %c0_1 = arith.constant 0 : index
    %c0_2 = arith.constant 0 : index
    %0 = vector.load %arg1[%c0, %c0_0, %c0_1, %c0_2] : memref<1x10x18x128xf32, #tpu.memory_space<vmem>>, vector<1x8x16x128xf32>
    %1 = vector.shape_cast %0 : vector<1x8x16x128xf32> to vector<8x16x128xf32>
    %2 = vector.shape_cast %1 : vector<8x16x128xf32> to vector<128x128xf32>
    %c0_3 = arith.constant 0 : index
    %c0_4 = arith.constant 0 : index
    %3 = vector.load %arg5[%c0_3, %c0_4] : memref<128x1152xf32, #tpu.memory_space<vmem>>, vector<128x128xf32>
    tpu.vector_store %arg5[%c0_3, %c0_4], %2 {strides = array<i32>} : memref<128x1152xf32, #tpu.memory_space<vmem>>, vector<128x128xf32>,
    %c0_5 = arith.constant 0 : index
    %c0_6 = arith.constant 0 : index
    %c1 = arith.constant 1 : index
    %c0_7 = arith.constant 0 : index
    %4 = vector.load %arg1[%c0_5, %c0_6, %c1, %c0_7] : memref<1x10x18x128xf32, #tpu.memory_space<vmem>>, vector<1x8x16x128xf32>
    %5 = vector.shape_cast %4 : vector<1x8x16x128xf32> to vector<8x16x128xf32>
    %6 = vector.shape_cast %5 : vector<8x16x128xf32> to vector<128x128xf32>
    %c0_8 = arith.constant 0 : index
    %c128 = arith.constant 128 : index
    %7 = vector.load %arg5[%c0_8, %c128] : memref<128x1152xf32, #tpu.memory_space<vmem>>, vector<128x128xf32>
    tpu.vector_store %arg5[%c0_8, %c128], %6 {strides = array<i32>} : memref<128x1152xf32, #tpu.memory_space<vmem>>, vector<128x128xf32>,
    %c0_9 = arith.constant 0 : index
    %c0_10 = arith.constant 0 : index
    %c2 = arith.constant 2 : index
    %c0_11 = arith.constant 0 : index
    %8 = vector.load %arg1[%c0_9, %c0_10, %c2, %c0_11] : memref<1x10x18x128xf32, #tpu.memory_space<vmem>>, vector<1x8x16x128xf32>
    %9 = vector.shape_cast %8 : vector<1x8x16x128xf32> to vector<8x16x128xf32>
    %10 = vector.shape_cast %9 : vector<8x16x128xf32> to vector<128x128xf32>
    %c0_12 = arith.constant 0 : index
    %c256 = arith.constant 256 : index
    %11 = vector.load %arg5[%c0_12, %c256] : memref<128x1152xf32, #tpu.memory_space<vmem>>, vector<128x128xf32>
    tpu.vector_store %arg5[%c0_12, %c256], %10 {strides = array<i32>} : memref<128x1152xf32, #tpu.memory_space<vmem>>, vector<128x128xf32>,
    %c0_13 = arith.constant 0 : index
    %c1_14 = arith.constant 1 : index
    %c0_15 = arith.constant 0 : index
    %c0_16 = arith.constant 0 : index
    %12 = vector.load %arg1[%c0_13, %c1_14, %c0_15, %c0_16] : memref<1x10x18x128xf32, #tpu.memory_space<vmem>>, vector<1x8x16x128xf32>
    %13 = vector.shape_cast %12 : vector<1x8x16x128xf32> to vector<8x16x128xf32>
    %14 = vector.shape_cast %13 : vector<8x16x128xf32> to vector<128x128xf32>
    %c0_17 = arith.constant 0 : index
    %c384 = arith.constant 384 : index
    %15 = vector.load %arg5[%c0_17, %c384] : memref<128x1152xf32, #tpu.memory_space<vmem>>, vector<128x128xf32>
    tpu.vector_store %arg5[%c0_17, %c384], %14 {strides = array<i32>} : memref<128x1152xf32, #tpu.memory_space<vmem>>, vector<128x128xf32>,
    %c0_18 = arith.constant 0 : index
    %c1_19 = arith.constant 1 : index
    %c1_20 = arith.constant 1 : index
    %c0_21 = arith.constant 0 : index
    %16 = vector.load %arg1[%c0_18, %c1_19, %c1_20, %c0_21] : memref<1x10x18x128xf32, #tpu.memory_space<vmem>>, vector<1x8x16x128xf32>
    %17 = vector.shape_cast %16 : vector<1x8x16x128xf32> to vector<8x16x128xf32>
    %18 = vector.shape_cast %17 : vector<8x16x128xf32> to vector<128x128xf32>
    %c0_22 = arith.constant 0 : index
    %c512 = arith.constant 512 : index
    %19 = vector.load %arg5[%c0_22, %c512] : memref<128x1152xf32, #tpu.memory_space<vmem>>, vector<128x128xf32>
    tpu.vector_store %arg5[%c0_22, %c512], %18 {strides = array<i32>} : memref<128x1152xf32, #tpu.memory_space<vmem>>, vector<128x128xf32>,
    %c0_23 = arith.constant 0 : index
    %c1_24 = arith.constant 1 : index
    %c2_25 = arith.constant 2 : index
    %c0_26 = arith.constant 0 : index
    %20 = vector.load %arg1[%c0_23, %c1_24, %c2_25, %c0_26] : memref<1x10x18x128xf32, #tpu.memory_space<vmem>>, vector<1x8x16x128xf32>
    %21 = vector.shape_cast %20 : vector<1x8x16x128xf32> to vector<8x16x128xf32>
    %22 = vector.shape_cast %21 : vector<8x16x128xf32> to vector<128x128xf32>
    %c0_27 = arith.constant 0 : index
    %c640 = arith.constant 640 : index
    %23 = vector.load %arg5[%c0_27, %c640] : memref<128x1152xf32, #tpu.memory_space<vmem>>, vector<128x128xf32>
    tpu.vector_store %arg5[%c0_27, %c640], %22 {strides = array<i32>} : memref<128x1152xf32, #tpu.memory_space<vmem>>, vector<128x128xf32>,
    %c0_28 = arith.constant 0 : index
    %c2_29 = arith.constant 2 : index
    %c0_30 = arith.constant 0 : index
    %c0_31 = arith.constant 0 : index
    %24 = vector.load %arg1[%c0_28, %c2_29, %c0_30, %c0_31] : memref<1x10x18x128xf32, #tpu.memory_space<vmem>>, vector<1x8x16x128xf32>
    %25 = vector.shape_cast %24 : vector<1x8x16x128xf32> to vector<8x16x128xf32>
    %26 = vector.shape_cast %25 : vector<8x16x128xf32> to vector<128x128xf32>
    %c0_32 = arith.constant 0 : index
    %c768 = arith.constant 768 : index
    %27 = vector.load %arg5[%c0_32, %c768] : memref<128x1152xf32, #tpu.memory_space<vmem>>, vector<128x128xf32>
    tpu.vector_store %arg5[%c0_32, %c768], %26 {strides = array<i32>} : memref<128x1152xf32, #tpu.memory_space<vmem>>, vector<128x128xf32>,
    %c0_33 = arith.constant 0 : index
    %c2_34 = arith.constant 2 : index
    %c1_35 = arith.constant 1 : index
    %c0_36 = arith.constant 0 : index
    %28 = vector.load %arg1[%c0_33, %c2_34, %c1_35, %c0_36] : memref<1x10x18x128xf32, #tpu.memory_space<vmem>>, vector<1x8x16x128xf32>
    %29 = vector.shape_cast %28 : vector<1x8x16x128xf32> to vector<8x16x128xf32>
    %30 = vector.shape_cast %29 : vector<8x16x128xf32> to vector<128x128xf32>
    %c0_37 = arith.constant 0 : index
    %c896 = arith.constant 896 : index
    %31 = vector.load %arg5[%c0_37, %c896] : memref<128x1152xf32, #tpu.memory_space<vmem>>, vector<128x128xf32>
    tpu.vector_store %arg5[%c0_37, %c896], %30 {strides = array<i32>} : memref<128x1152xf32, #tpu.memory_space<vmem>>, vector<128x128xf32>,
    %c0_38 = arith.constant 0 : index
    %c2_39 = arith.constant 2 : index
    %c2_40 = arith.constant 2 : index
    %c0_41 = arith.constant 0 : index
    %32 = vector.load %arg1[%c0_38, %c2_39, %c2_40, %c0_41] : memref<1x10x18x128xf32, #tpu.memory_space<vmem>>, vector<1x8x16x128xf32>
    %33 = vector.shape_cast %32 : vector<1x8x16x128xf32> to vector<8x16x128xf32>
    %34 = vector.shape_cast %33 : vector<8x16x128xf32> to vector<128x128xf32>
    %c0_42 = arith.constant 0 : index
    %c1024 = arith.constant 1024 : index
    %35 = vector.load %arg5[%c0_42, %c1024] : memref<128x1152xf32, #tpu.memory_space<vmem>>, vector<128x128xf32>
    tpu.vector_store %arg5[%c0_42, %c1024], %34 {strides = array<i32>} : memref<128x1152xf32, #tpu.memory_space<vmem>>, vector<128x128xf32>,
    %c0_43 = arith.constant 0 : index
    %c0_44 = arith.constant 0 : index
    %36 = vector.load %arg5[%c0_43, %c0_44] : memref<128x1152xf32, #tpu.memory_space<vmem>>, vector<128x1152xf32>
    %c0_45 = arith.constant 0 : index
    %c0_46 = arith.constant 0 : index
    %37 = vector.load %arg2[%c0_45, %c0_46] : memref<1152x128xf32, #tpu.memory_space<vmem>>, vector<1152x128xf32>
    %cst = arith.constant dense<0.000000e+00> : vector<128x128xf32>
    %38 = tpu.matmul %36, %37, %cst {dimension_numbers = #tpu.dot_dimension_numbers<[1], [0], [0], [1], [0, 0, 1, 1], [], []>} : vector<128x1152xf32>, vector<1152x128xf32>, vector<128x128xf32> -> vector<128x128xf32>
    %39 = vector.shape_cast %38 : vector<128x128xf32> to vector<8x16x128xf32>
    %c0_47 = arith.constant 0 : index
    %c0_48 = arith.constant 0 : index
    %c0_49 = arith.constant 0 : index
    %c0_50 = arith.constant 0 : index
    %40 = vector.load %arg3[%c0_47, %c0_48, %c0_49, %c0_50] : memref<1x8x16x128xf32, #tpu.memory_space<vmem>>, vector<1x8x16x128xf32>
    %41 = vector.shape_cast %40 : vector<1x8x16x128xf32> to vector<8x16x128xf32>
    %42 = vector.shape_cast %39 : vector<8x16x128xf32> to vector<1x8x16x128xf32>
    tpu.vector_store %arg3[%c0_47, %c0_48, %c0_49, %c0_50], %42 {strides = array<i32>} : memref<1x8x16x128xf32, #tpu.memory_space<vmem>>, vector<1x8x16x128xf32>,
    %cst_51 = arith.constant dense<0.000000e+00> : vector<128xf32>
    %43 = vector.multi_reduction <add>, %38, %cst_51 [0] : vector<128x128xf32> to vector<128xf32>
    %44 = vector.shape_cast %43 : vector<128xf32> to vector<1x128xf32>
    %cst_52 = arith.constant 7.812500e-03 : f32
    %45 = vector.broadcast %cst_52 : f32 to vector<1x128xf32>
    %46 = arith.mulf %44, %45 : vector<1x128xf32>
    %47 = vector.broadcast %46 : vector<1x128xf32> to vector<128x128xf32>
    %48 = arith.subf %38, %47 : vector<128x128xf32>
    %49 = arith.mulf %48, %48 : vector<128x128xf32>
    %cst_53 = arith.constant dense<0.000000e+00> : vector<128xf32>
    %50 = vector.multi_reduction <add>, %49, %cst_53 [0] : vector<128x128xf32> to vector<128xf32>
    %51 = vector.shape_cast %50 : vector<128xf32> to vector<1x128xf32>
    %c0_54 = arith.constant 0 : index
    %c0_55 = arith.constant 0 : index
    %c0_56 = arith.constant 0 : index
    %52 = vector.load %arg4[%c0_54, %c0_55, %c0_56] : memref<1x2x128xf32, #tpu.memory_space<vmem>>, vector<1x1x128xf32>
    %53 = vector.shape_cast %52 : vector<1x1x128xf32> to vector<1x128xf32>
    %54 = vector.shape_cast %44 : vector<1x128xf32> to vector<1x1x128xf32>
    tpu.vector_store %arg4[%c0_54, %c0_55, %c0_56], %54 {strides = array<i32>} : memref<1x2x128xf32, #tpu.memory_space<vmem>>, vector<1x1x128xf32>,
    %c0_57 = arith.constant 0 : index
    %c1_58 = arith.constant 1 : index
    %c0_59 = arith.constant 0 : index
    %55 = vector.load %arg4[%c0_57, %c1_58, %c0_59] : memref<1x2x128xf32, #tpu.memory_space<vmem>>, vector<1x1x128xf32>
    %56 = vector.shape_cast %55 : vector<1x1x128xf32> to vector<1x128xf32>
    %57 = vector.shape_cast %51 : vector<1x128xf32> to vector<1x1x128xf32>
    tpu.vector_store %arg4[%c0_57, %c1_58, %c0_59], %57 {strides = array<i32>} : memref<1x2x128xf32, #tpu.memory_space<vmem>>, vector<1x1x128xf32>,
    return
  }
  func.func @transform_0(%arg0: i32) -> (i32, i32, i32, i32) {
    %c0_i32 = arith.constant 0 : i32
    %c0_i32_0 = arith.constant 0 : i32
    %c0_i32_1 = arith.constant 0 : i32
    %c0_i32_2 = arith.constant 0 : i32
    return %arg0, %c0_i32, %c0_i32_0, %c0_i32_1 : i32, i32, i32, i32
  }
  func.func @transform_1(%arg0: i32) -> (i32, i32) {
    %c0_i32 = arith.constant 0 : i32
    %c0_i32_0 = arith.constant 0 : i32
    %c0_i32_1 = arith.constant 0 : i32
    return %c0_i32, %c0_i32_0 : i32, i32
  }
  func.func @transform_2(%arg0: i32) -> (i32, i32, i32, i32) {
    %c0_i32 = arith.constant 0 : i32
    %c0_i32_0 = arith.constant 0 : i32
    %c0_i32_1 = arith.constant 0 : i32
    %c0_i32_2 = arith.constant 0 : i32
    return %arg0, %c0_i32, %c0_i32_0, %c0_i32_1 : i32, i32, i32, i32
  }
  func.func @transform_3(%arg0: i32) -> (i32, i32, i32) {
    %c0_i32 = arith.constant 0 : i32
    %c0_i32_0 = arith.constant 0 : i32
    %c0_i32_1 = arith.constant 0 : i32
    return %arg0, %c0_i32, %c0_i32_0 : i32, i32, i32
  }
}

module attributes {stable_mosaic.version = 11 : i64} {
  func.func @_bn_add_relu_kernel(%arg0: i32, %arg1: memref<1x8x16x128xf32, #tpu.memory_space<vmem>>, %arg2: memref<1x128xf32, #tpu.memory_space<vmem>>, %arg3: memref<1x128xf32, #tpu.memory_space<vmem>>, %arg4: memref<1x10x18x128xf32, #tpu.memory_space<vmem>>, %arg5: memref<1x8x16x128xf32, #tpu.memory_space<vmem>>) attributes {dimension_semantics = [#tpu.dimension_semantics<parallel>], iteration_bounds = array<i64: 4>, scalar_prefetch = 0 : i64, scratch_operands = 0 : i64, tpu.core_type = #tpu.core_type<tc>, window_params = [{transform_indices = @transform_0, window_bounds = array<i64: 1, 8, 16, 128>}, {pipeline_mode = #tpu.pipeline_mode<synchronous>, transform_indices = @transform_1, window_bounds = array<i64: 1, 128>}, {pipeline_mode = #tpu.pipeline_mode<synchronous>, transform_indices = @transform_2, window_bounds = array<i64: 1, 128>}, {transform_indices = @transform_3, window_bounds = array<i64: 1, 10, 18, 128>}, {transform_indices = @transform_4, window_bounds = array<i64: 1, 8, 16, 128>}]} {
    %c0 = arith.constant 0 : index
    %c1 = arith.constant 1 : index
    %c1_0 = arith.constant 1 : index
    %c0_1 = arith.constant 0 : index
    %0 = vector.load %arg4[%c0, %c1, %c1_0, %c0_1] : memref<1x10x18x128xf32, #tpu.memory_space<vmem>>, vector<1x8x16x128xf32>
    %1 = vector.shape_cast %0 : vector<1x8x16x128xf32> to vector<8x16x128xf32>
    %c0_2 = arith.constant 0 : index
    %c0_3 = arith.constant 0 : index
    %c0_4 = arith.constant 0 : index
    %c0_5 = arith.constant 0 : index
    %2 = vector.load %arg1[%c0_2, %c0_3, %c0_4, %c0_5] : memref<1x8x16x128xf32, #tpu.memory_space<vmem>>, vector<1x8x16x128xf32>
    %3 = vector.shape_cast %2 : vector<1x8x16x128xf32> to vector<8x16x128xf32>
    %c0_6 = arith.constant 0 : index
    %c0_7 = arith.constant 0 : index
    %4 = vector.load %arg2[%c0_6, %c0_7] : memref<1x128xf32, #tpu.memory_space<vmem>>, vector<1x128xf32>
    %5 = vector.shape_cast %4 : vector<1x128xf32> to vector<128xf32>
    %6 = vector.shape_cast %5 : vector<128xf32> to vector<1x1x128xf32>
    %7 = vector.broadcast %6 : vector<1x1x128xf32> to vector<8x16x128xf32>
    %8 = arith.mulf %3, %7 : vector<8x16x128xf32>
    %c0_8 = arith.constant 0 : index
    %c0_9 = arith.constant 0 : index
    %9 = vector.load %arg3[%c0_8, %c0_9] : memref<1x128xf32, #tpu.memory_space<vmem>>, vector<1x128xf32>
    %10 = vector.shape_cast %9 : vector<1x128xf32> to vector<128xf32>
    %11 = vector.shape_cast %10 : vector<128xf32> to vector<1x1x128xf32>
    %12 = vector.broadcast %11 : vector<1x1x128xf32> to vector<8x16x128xf32>
    %13 = arith.addf %8, %12 : vector<8x16x128xf32>
    %14 = arith.addf %13, %1 : vector<8x16x128xf32>
    %cst = arith.constant 0.000000e+00 : f32
    %15 = vector.broadcast %cst : f32 to vector<8x16x128xf32>
    %16 = arith.maximumf %14, %15 : vector<8x16x128xf32>
    %c0_10 = arith.constant 0 : index
    %c0_11 = arith.constant 0 : index
    %c0_12 = arith.constant 0 : index
    %c0_13 = arith.constant 0 : index
    %17 = vector.load %arg5[%c0_10, %c0_11, %c0_12, %c0_13] : memref<1x8x16x128xf32, #tpu.memory_space<vmem>>, vector<1x8x16x128xf32>
    %18 = vector.shape_cast %17 : vector<1x8x16x128xf32> to vector<8x16x128xf32>
    %19 = vector.shape_cast %16 : vector<8x16x128xf32> to vector<1x8x16x128xf32>
    tpu.vector_store %arg5[%c0_10, %c0_11, %c0_12, %c0_13], %19 {strides = array<i32>} : memref<1x8x16x128xf32, #tpu.memory_space<vmem>>, vector<1x8x16x128xf32>,
    return
  }
  func.func @transform_0(%arg0: i32) -> (i32, i32, i32, i32) {
    %c0_i32 = arith.constant 0 : i32
    %c0_i32_0 = arith.constant 0 : i32
    %c0_i32_1 = arith.constant 0 : i32
    %c0_i32_2 = arith.constant 0 : i32
    return %arg0, %c0_i32, %c0_i32_0, %c0_i32_1 : i32, i32, i32, i32
  }
  func.func @transform_1(%arg0: i32) -> (i32, i32) {
    %c0_i32 = arith.constant 0 : i32
    %c0_i32_0 = arith.constant 0 : i32
    %c0_i32_1 = arith.constant 0 : i32
    return %c0_i32, %c0_i32_0 : i32, i32
  }
  func.func @transform_2(%arg0: i32) -> (i32, i32) {
    %c0_i32 = arith.constant 0 : i32
    %c0_i32_0 = arith.constant 0 : i32
    %c0_i32_1 = arith.constant 0 : i32
    return %c0_i32, %c0_i32_0 : i32, i32
  }
  func.func @transform_3(%arg0: i32) -> (i32, i32, i32, i32) {
    %c0_i32 = arith.constant 0 : i32
    %c0_i32_0 = arith.constant 0 : i32
    %c0_i32_1 = arith.constant 0 : i32
    %c0_i32_2 = arith.constant 0 : i32
    return %arg0, %c0_i32, %c0_i32_0, %c0_i32_1 : i32, i32, i32, i32
  }
  func.func @transform_4(%arg0: i32) -> (i32, i32, i32, i32) {
    %c0_i32 = arith.constant 0 : i32
    %c0_i32_0 = arith.constant 0 : i32
    %c0_i32_1 = arith.constant 0 : i32
    %c0_i32_2 = arith.constant 0 : i32
    return %arg0, %c0_i32, %c0_i32_0, %c0_i32_1 : i32, i32, i32, i32
  }
}

module attributes {stable_mosaic.version = 11 : i64} {
  func.func @_bn_relu_pad_kernel(%arg0: i32, %arg1: memref<1x8x16x128xf32, #tpu.memory_space<vmem>>, %arg2: memref<1x1x16x128xf32, #tpu.memory_space<vmem>>, %arg3: memref<1x1x16x128xf32, #tpu.memory_space<vmem>>, %arg4: memref<1x128xf32, #tpu.memory_space<vmem>>, %arg5: memref<1x128xf32, #tpu.memory_space<vmem>>, %arg6: memref<1x10x18x128xf32, #tpu.memory_space<vmem>>) attributes {dimension_semantics = [#tpu.dimension_semantics<parallel>], iteration_bounds = array<i64: 4>, scalar_prefetch = 0 : i64, scratch_operands = 0 : i64, tpu.core_type = #tpu.core_type<tc>, window_params = [{transform_indices = @transform_0, window_bounds = array<i64: 1, 8, 16, 128>}, {transform_indices = @transform_1, window_bounds = array<i64: 1, 1, 16, 128>}, {transform_indices = @transform_2, window_bounds = array<i64: 1, 1, 16, 128>}, {pipeline_mode = #tpu.pipeline_mode<synchronous>, transform_indices = @transform_3, window_bounds = array<i64: 1, 128>}, {pipeline_mode = #tpu.pipeline_mode<synchronous>, transform_indices = @transform_4, window_bounds = array<i64: 1, 128>}, {transform_indices = @transform_5, window_bounds = array<i64: 1, 10, 18, 128>}]} {
    %c0 = arith.constant 0 : index
    %c0_0 = arith.constant 0 : index
    %0 = vector.load %arg4[%c0, %c0_0] : memref<1x128xf32, #tpu.memory_space<vmem>>, vector<1x128xf32>
    %1 = vector.shape_cast %0 : vector<1x128xf32> to vector<128xf32>
    %c0_1 = arith.constant 0 : index
    %c0_2 = arith.constant 0 : index
    %2 = vector.load %arg5[%c0_1, %c0_2] : memref<1x128xf32, #tpu.memory_space<vmem>>, vector<1x128xf32>
    %3 = vector.shape_cast %2 : vector<1x128xf32> to vector<128xf32>
    %cst = arith.constant 0.000000e+00 : f32
    %4 = vector.broadcast %cst : f32 to vector<1x10x18x128xf32>
    %c0_3 = arith.constant 0 : index
    %c0_4 = arith.constant 0 : index
    %c0_5 = arith.constant 0 : index
    %c0_6 = arith.constant 0 : index
    %5 = vector.load %arg6[%c0_3, %c0_4, %c0_5, %c0_6] : memref<1x10x18x128xf32, #tpu.memory_space<vmem>>, vector<1x10x18x128xf32>
    tpu.vector_store %arg6[%c0_3, %c0_4, %c0_5, %c0_6], %4 {strides = array<i32>} : memref<1x10x18x128xf32, #tpu.memory_space<vmem>>, vector<1x10x18x128xf32>,
    %c0_7 = arith.constant 0 : index
    %c0_8 = arith.constant 0 : index
    %c0_9 = arith.constant 0 : index
    %c0_10 = arith.constant 0 : index
    %6 = vector.load %arg1[%c0_7, %c0_8, %c0_9, %c0_10] : memref<1x8x16x128xf32, #tpu.memory_space<vmem>>, vector<1x8x16x128xf32>
    %7 = vector.shape_cast %6 : vector<1x8x16x128xf32> to vector<8x16x128xf32>
    %8 = vector.shape_cast %1 : vector<128xf32> to vector<1x1x128xf32>
    %9 = vector.broadcast %8 : vector<1x1x128xf32> to vector<8x16x128xf32>
    %10 = arith.mulf %7, %9 : vector<8x16x128xf32>
    %11 = vector.shape_cast %3 : vector<128xf32> to vector<1x1x128xf32>
    %12 = vector.broadcast %11 : vector<1x1x128xf32> to vector<8x16x128xf32>
    %13 = arith.addf %10, %12 : vector<8x16x128xf32>
    %cst_11 = arith.constant 0.000000e+00 : f32
    %14 = vector.broadcast %cst_11 : f32 to vector<8x16x128xf32>
    %15 = arith.maximumf %13, %14 : vector<8x16x128xf32>
    %c0_12 = arith.constant 0 : index
    %c1 = arith.constant 1 : index
    %c1_13 = arith.constant 1 : index
    %c0_14 = arith.constant 0 : index
    %16 = vector.load %arg6[%c0_12, %c1, %c1_13, %c0_14] : memref<1x10x18x128xf32, #tpu.memory_space<vmem>>, vector<1x8x16x128xf32>
    %17 = vector.shape_cast %16 : vector<1x8x16x128xf32> to vector<8x16x128xf32>
    %18 = vector.shape_cast %15 : vector<8x16x128xf32> to vector<1x8x16x128xf32>
    tpu.vector_store %arg6[%c0_12, %c1, %c1_13, %c0_14], %18 {strides = array<i32>} : memref<1x10x18x128xf32, #tpu.memory_space<vmem>>, vector<1x8x16x128xf32>,
    %c0_15 = arith.constant 0 : index
    %c0_16 = arith.constant 0 : index
    %c0_17 = arith.constant 0 : index
    %c0_18 = arith.constant 0 : index
    %19 = vector.load %arg2[%c0_15, %c0_16, %c0_17, %c0_18] : memref<1x1x16x128xf32, #tpu.memory_space<vmem>>, vector<1x1x16x128xf32>
    %20 = vector.shape_cast %19 : vector<1x1x16x128xf32> to vector<1x16x128xf32>
    %21 = vector.shape_cast %1 : vector<128xf32> to vector<1x1x128xf32>
    %22 = vector.broadcast %21 : vector<1x1x128xf32> to vector<1x16x128xf32>
    %23 = arith.mulf %20, %22 : vector<1x16x128xf32>
    %24 = vector.shape_cast %3 : vector<128xf32> to vector<1x1x128xf32>
    %25 = vector.broadcast %24 : vector<1x1x128xf32> to vector<1x16x128xf32>
    %26 = arith.addf %23, %25 : vector<1x16x128xf32>
    %cst_19 = arith.constant 0.000000e+00 : f32
    %27 = vector.broadcast %cst_19 : f32 to vector<1x16x128xf32>
    %28 = arith.maximumf %26, %27 : vector<1x16x128xf32>
    %c2_i32 = arith.constant 2 : i32
    %c0_i32 = arith.constant 0 : i32
    %29 = arith.cmpi eq, %c2_i32, %c0_i32 : i32
    %c1_i32 = arith.constant 1 : i32
    %30 = arith.select %29, %c1_i32, %c2_i32 : i32
    %31 = arith.remsi %arg0, %30 : i32
    %c0_i32_20 = arith.constant 0 : i32
    %32 = arith.cmpi ne, %31, %c0_i32_20 : i32
    %c0_i32_21 = arith.constant 0 : i32
    %33 = arith.cmpi slt, %31, %c0_i32_21 : i32
    %c0_i32_22 = arith.constant 0 : i32
    %34 = arith.cmpi slt, %30, %c0_i32_22 : i32
    %35 = arith.xori %33, %34 : i1
    %36 = arith.andi %35, %32 : i1
    %37 = arith.addi %31, %30 : i32
    %38 = arith.select %36, %37, %31 : i32
    %c0_i32_23 = arith.constant 0 : i32
    %39 = arith.cmpi eq, %38, %c0_i32_23 : i32
    %cst_24 = arith.constant 0.000000e+00 : f32
    %40 = vector.broadcast %cst_24 : f32 to vector<1x16x128xf32>
    %41 = arith.select %39, %40, %28 : vector<1x16x128xf32>
    %c0_25 = arith.constant 0 : index
    %c0_26 = arith.constant 0 : index
    %c1_27 = arith.constant 1 : index
    %c0_28 = arith.constant 0 : index
    %42 = vector.load %arg6[%c0_25, %c0_26, %c1_27, %c0_28] : memref<1x10x18x128xf32, #tpu.memory_space<vmem>>, vector<1x1x16x128xf32>
    %43 = vector.shape_cast %42 : vector<1x1x16x128xf32> to vector<1x16x128xf32>
    %44 = vector.shape_cast %41 : vector<1x16x128xf32> to vector<1x1x16x128xf32>
    tpu.vector_store %arg6[%c0_25, %c0_26, %c1_27, %c0_28], %44 {strides = array<i32>} : memref<1x10x18x128xf32, #tpu.memory_space<vmem>>, vector<1x1x16x128xf32>,
    %c0_29 = arith.constant 0 : index
    %c0_30 = arith.constant 0 : index
    %c0_31 = arith.constant 0 : index
    %c0_32 = arith.constant 0 : index
    %45 = vector.load %arg3[%c0_29, %c0_30, %c0_31, %c0_32] : memref<1x1x16x128xf32, #tpu.memory_space<vmem>>, vector<1x1x16x128xf32>
    %46 = vector.shape_cast %45 : vector<1x1x16x128xf32> to vector<1x16x128xf32>
    %47 = vector.shape_cast %1 : vector<128xf32> to vector<1x1x128xf32>
    %48 = vector.broadcast %47 : vector<1x1x128xf32> to vector<1x16x128xf32>
    %49 = arith.mulf %46, %48 : vector<1x16x128xf32>
    %50 = vector.shape_cast %3 : vector<128xf32> to vector<1x1x128xf32>
    %51 = vector.broadcast %50 : vector<1x1x128xf32> to vector<1x16x128xf32>
    %52 = arith.addf %49, %51 : vector<1x16x128xf32>
    %cst_33 = arith.constant 0.000000e+00 : f32
    %53 = vector.broadcast %cst_33 : f32 to vector<1x16x128xf32>
    %54 = arith.maximumf %52, %53 : vector<1x16x128xf32>
    %c2_i32_34 = arith.constant 2 : i32
    %c0_i32_35 = arith.constant 0 : i32
    %55 = arith.cmpi eq, %c2_i32_34, %c0_i32_35 : i32
    %c1_i32_36 = arith.constant 1 : i32
    %56 = arith.select %55, %c1_i32_36, %c2_i32_34 : i32
    %57 = arith.remsi %arg0, %56 : i32
    %c0_i32_37 = arith.constant 0 : i32
    %58 = arith.cmpi ne, %57, %c0_i32_37 : i32
    %c0_i32_38 = arith.constant 0 : i32
    %59 = arith.cmpi slt, %57, %c0_i32_38 : i32
    %c0_i32_39 = arith.constant 0 : i32
    %60 = arith.cmpi slt, %56, %c0_i32_39 : i32
    %61 = arith.xori %59, %60 : i1
    %62 = arith.andi %61, %58 : i1
    %63 = arith.addi %57, %56 : i32
    %64 = arith.select %62, %63, %57 : i32
    %c1_i32_40 = arith.constant 1 : i32
    %65 = arith.cmpi eq, %64, %c1_i32_40 : i32
    %cst_41 = arith.constant 0.000000e+00 : f32
    %66 = vector.broadcast %cst_41 : f32 to vector<1x16x128xf32>
    %67 = arith.select %65, %66, %54 : vector<1x16x128xf32>
    %c0_42 = arith.constant 0 : index
    %c9 = arith.constant 9 : index
    %c1_43 = arith.constant 1 : index
    %c0_44 = arith.constant 0 : index
    %68 = vector.load %arg6[%c0_42, %c9, %c1_43, %c0_44] : memref<1x10x18x128xf32, #tpu.memory_space<vmem>>, vector<1x1x16x128xf32>
    %69 = vector.shape_cast %68 : vector<1x1x16x128xf32> to vector<1x16x128xf32>
    %70 = vector.shape_cast %67 : vector<1x16x128xf32> to vector<1x1x16x128xf32>
    tpu.vector_store %arg6[%c0_42, %c9, %c1_43, %c0_44], %70 {strides = array<i32>} : memref<1x10x18x128xf32, #tpu.memory_space<vmem>>, vector<1x1x16x128xf32>,
    return
  }
  func.func @transform_0(%arg0: i32) -> (i32, i32, i32, i32) {
    %c0_i32 = arith.constant 0 : i32
    %c0_i32_0 = arith.constant 0 : i32
    %c0_i32_1 = arith.constant 0 : i32
    %c0_i32_2 = arith.constant 0 : i32
    return %arg0, %c0_i32, %c0_i32_0, %c0_i32_1 : i32, i32, i32, i32
  }
  func.func @transform_1(%arg0: i32) -> (i32, i32, i32, i32) {
    %c1_i32 = arith.constant 1 : i32
    %0 = arith.subi %arg0, %c1_i32 : i32
    %c0_i32 = arith.constant 0 : i32
    %1 = arith.maxsi %0, %c0_i32 : i32
    %c7_i32 = arith.constant 7 : i32
    %c0_i32_0 = arith.constant 0 : i32
    %c0_i32_1 = arith.constant 0 : i32
    %c0_i32_2 = arith.constant 0 : i32
    return %1, %c7_i32, %c0_i32_0, %c0_i32_1 : i32, i32, i32, i32
  }
  func.func @transform_2(%arg0: i32) -> (i32, i32, i32, i32) {
    %c1_i32 = arith.constant 1 : i32
    %0 = arith.addi %arg0, %c1_i32 : i32
    %c3_i32 = arith.constant 3 : i32
    %1 = arith.minsi %0, %c3_i32 : i32
    %c0_i32 = arith.constant 0 : i32
    %c0_i32_0 = arith.constant 0 : i32
    %c0_i32_1 = arith.constant 0 : i32
    %c0_i32_2 = arith.constant 0 : i32
    return %1, %c0_i32, %c0_i32_0, %c0_i32_1 : i32, i32, i32, i32
  }
  func.func @transform_3(%arg0: i32) -> (i32, i32) {
    %c0_i32 = arith.constant 0 : i32
    %c0_i32_0 = arith.constant 0 : i32
    %c0_i32_1 = arith.constant 0 : i32
    return %c0_i32, %c0_i32_0 : i32, i32
  }
  func.func @transform_4(%arg0: i32) -> (i32, i32) {
    %c0_i32 = arith.constant 0 : i32
    %c0_i32_0 = arith.constant 0 : i32
    %c0_i32_1 = arith.constant 0 : i32
    return %c0_i32, %c0_i32_0 : i32, i32
  }
  func.func @transform_5(%arg0: i32) -> (i32, i32, i32, i32) {
    %c0_i32 = arith.constant 0 : i32
    %c0_i32_0 = arith.constant 0 : i32
    %c0_i32_1 = arith.constant 0 : i32
    %c0_i32_2 = arith.constant 0 : i32
    return %arg0, %c0_i32, %c0_i32_0, %c0_i32_1 : i32, i32, i32, i32
  }
}

</mosaic_0001>

<bundles_post_ra>
// kernel: basic_block_forward.5
= control target key start
LH: loop header
LB: loop body
LE: loop exit
PB: predicated region body
PF: predicated region fallthrough
CT: control target
= control target key end

     0   :  { %s663_s18 = smov 0   ;;  %s878_s0 = inlined_call_operand.vmem [shape: f32[4,8,16,128], index: 0, kind: input, shape index: {}, may-alias: {0,1,2}]   ;;  %s879_s1 = inlined_call_operand.vmem [shape: f32[4,8,16,128], index: 1, kind: input, shape index: {}, may-alias: {0,1,2}]   ;;  %s880_s2 = inlined_call_operand.vmem [shape: f32[4,8,16,128], index: 2, kind: input, shape index: {}, may-alias: {0,1,2}]   ;;  %s881_s3 = inlined_call_operand.vmem [shape: f32[1,128], index: 3, kind: input, shape index: {}]   ;;  %s882_s4 = inlined_call_operand.vmem [shape: f32[1,128], index: 4, kind: input, shape index: {}]   ;;  %s883_s5 = inlined_call_operand.vmem [shape: f32[4,10,18,128], index: 5, kind: output, shape index: {}]  }
   0x1 LB: > { %s669_s19 = sadd.s32 4294967295, %s630_s18   ;;  %p565_p0 = scmp.ge.s32.totalorder %s630_s18, 1  ;;  %s630_s18 = sphi %s663_s18, %s15_s18  }
   0x2   : > { %p232_p1 = scmp.lt.s32.totalorder %s630_s18, 5 }
   0x4   : > { %p233_p2 = pnand %p565_p0, %p232_p1 }
   0x5   : > { %p277_p3 = scmp.lt.s32.totalorder (!%p233_p2), %s669_s19, 3  ;;  %s568_s25 = sadd.s32 (!%p233_p2), 4294967295, %s669_s19 }
   0x6   : > { %236 = sbr.rel (%p233_p2) target bundleno = 66 (0x42), region = 40  ;;  %s438_s26 = ssub.s32 (!%p233_p2), 0, %s669_s19 }
   0x7   : > { %p283_p4 = scmp.gt.s32.totalorder (!%p233_p2), %s568_s25, 0  ;;  %s600_s27 = smin.u32 (!%p233_p2), %s669_s19, %s438_s26 }
   0x8   : > { %s294_s29 = sadd.s32 (!%p233_p2), 1, %s669_s19  ;;  %p569_p5 = scmp.lt.s32.totalorder (!%p233_p2), %s568_s25, 3 }
   0x9   : > { %s440_s6 = sand.u32 (!%p233_p2), 1, %s600_s27   ;;  %p715_p6 = scmp.lt.s32.totalorder (!%p233_p2), %s294_s29, 3 }
   0xa   : > { %p437_p7 = scmp.lt.s32.totalorder (!%p233_p2), %s669_s19, 0  ;;  %s441_s13 = ssub.s32 (!%p233_p2), 0, %s440_s6 }
   0xb   : > { %s278_s20 = scalar_select %p277_p3, %s669_s19, 3  ;;  %v632_v0 = vmov 0.0   ;;  %v727_v1 = vld [vmem:[%s881_s3] ss:$0 sm:$0xff] }
   0xc   : > { %s284_s30 = scalar_select %p283_p4, %s568_s25, 0  ;;  %v752_v6 = vld [vmem:[%s882_s4] ss:$0 sm:$0xff] }
   0xd   : > { %s612_s21 = smul.u32 240, %s278_s20  ;;  %s607_s28 = sshll.u32 %s278_s20, 7 }
   0xe   : > { %s713_s9 = scalar_lea.vmem %s878_s0, %s607_s28  ;;  %s886_s30 = smov (!%p569_p5, %s284_s30), 3 }
   0xf   : > { %s678_s24 = scalar_lea.vmem %s883_s5, %s612_s21  ;;  %v342_v2 = vld [vmem:[%s713_s9] sm:$0xff]  ;;  %v343_v3 = vld [vmem:[%s713_s9 + $0x8] sm:$0xff]  ;;  %s888_s29 = smov (!%p715_p6, %s294_s29), 3  ;;  %v344_v4 = vld [vmem:[%s713_s9 + $0x10] sm:$0xff] }
  0x10   : > { %312 = vst [vmem:[%s678_s24] sm:$0xff] %v632_v0  ;;  %s890_s13 = smov (!%p437_p7, %s441_s13), %s440_s6  ;;  %v361_v5 = vmul.f32 %v727_v1, %v342_v2  ;;  %v345_v7 = vld [vmem:[%s713_s9 + $0x18] sm:$0xff]  ;;  %v362_v8 = vmul.f32 %v727_v1, %v343_v3  ;;  %v346_v9 = vld [vmem:[%s713_s9 + $0x20] sm:$0xff]  ;;  %v363_v10 = vmul.f32 %v727_v1, %v344_v4  ;;  %v347_v11 = vld [vmem:[%s713_s9 + $0x28] sm:$0xff]  ;;  %s892_s29 = smov (!%p715_p6, %s888_s29), 3 }
  0x11   : > { %313 = vst [vmem:[%s678_s24 + $0x8] sm:$0xff] %v632_v0  ;;  %v364_v12 = vmul.f32 %v727_v1, %v345_v7  ;;  %v348_v13 = vld [vmem:[%s713_s9 + $0x30] sm:$0xff]  ;;  %s610_s16 = sshll.u32 %s886_s30, 7  ;;  %p602_p8 = scmp.lt.s32.totalorder %s890_s13, 0  ;;  %v365_v15 = vmul.f32 %v727_v1, %v346_v9  ;;  %v349_v16 = vld [vmem:[%s713_s9 + $0x38] sm:$0xff]  ;;  %v366_v18 = vmul.f32 %v727_v1, %v347_v11  ;;  %v350_v19 = vld [vmem:[%s713_s9 + $0x40] sm:$0xff] }
  0x12   : > { %314 = vst [vmem:[%s678_s24 + $0x10] sm:$0x3] %v632_v0  ;;  %v380_v14 = vadd.f32 %v752_v6, %v361_v5  ;;  %s447_s17 = sadd.s32 2, %s890_s13  ;;  %v381_v17 = vadd.f32 %v752_v6, %v362_v8  ;;  %v382_v20 = vadd.f32 %v752_v6, %v363_v10  ;;  %v367_v21 = vmul.f32 %v727_v1, %v348_v13  ;;  %v351_v22 = vld [vmem:[%s713_s9 + $0x48] sm:$0xff]  ;;  %s791_s21 = scalar_lea.vmem %s879_s1, %s610_s16  ;;  %v352_v25 = vld [vmem:[%s713_s9 + $0x50] sm:$0xff]  ;;  %v353_v29 = vld [vmem:[%s713_s9 + $0x58] sm:$0xff] }
  0x13   : > { %315 = vst [vmem:[%s678_s24 + $0x18] sm:$0xff] %v632_v0  ;;  %s611_s22 = sshll.u32 %s892_s29, 7  ;;  %v383_v23 = vadd.f32 %v752_v6, %v364_v12  ;;  %v368_v24 = vmul.f32 %v727_v1, %v349_v16  ;;  %s894_s17 = smov (!%p602_p8, %s447_s17), %s890_s13  ;;  %v384_v27 = vadd.f32 %v752_v6, %v365_v15  ;;  %v369_v28 = vmul.f32 %v727_v1, %v350_v19  ;;  %v354_v33 = vld [vmem:[%s713_s9 + $0x60] sm:$0xff]  ;;  %v355_v37 = vld [vmem:[%s713_s9 + $0x68] sm:$0xff]  ;;  %v598_v38 = vld [vmem:[%s791_s21 + $0x70] sm:$0xff] }
  0x14   : > { %316 = vst [vmem:[%s678_s24 + $0x20] sm:$0xff] %v632_v0  ;;  %v396_v26 = vmax.f32 %v380_v14, 0.0  ;;  %v397_v30 = vmax.f32 %v381_v17, 0.0  ;;  %v385_v31 = vadd.f32 %v752_v6, %v366_v18  ;;  %v370_v32 = vmul.f32 %v727_v1, %v351_v22  ;;  %s301_s26 = scalar_lea.vmem %s880_s2, %s611_s22  ;;  %v356_v42 = vld [vmem:[%s713_s9 + $0x70] sm:$0xff]  ;;  %p449_p9 = scmp.eq.s32.totalorder %s894_s17, 0  ;;  %v599_v43 = vld [vmem:[%s791_s21 + $0x78] sm:$0xff] }
  0x15   : > { %317 = vst [vmem:[%s678_s24 + $0x28] sm:$0x3] %v632_v0  ;;  %v398_v34 = vmax.f32 %v382_v20, 0.0  ;;  %v386_v35 = vadd.f32 %v752_v6, %v367_v21  ;;  %v371_v36 = vmul.f32 %v727_v1, %v352_v25  ;;  %v399_v39 = vmax.f32 %v383_v23, 0.0  ;;  %v357_v47 = vld [vmem:[%s713_s9 + $0x78] sm:$0xff]  ;;  %v457_v48 = vld [vmem:[%s301_s26] sm:$0xff] }
  0x16   : > { %318 = vst [vmem:[%s678_s24 + $0x30] sm:$0xff] %v632_v0  ;;  %v387_v40 = vadd.f32 %v752_v6, %v368_v24  ;;  %v372_v41 = vmul.f32 %v727_v1, %v353_v29  ;;  %v400_v44 = vmax.f32 %v384_v27, 0.0  ;;  %v388_v45 = vadd.f32 %v752_v6, %v369_v28  ;;  %p465_p10 = scmp.eq.s32.totalorder %s894_s17, 1  ;;  %v458_v53 = vld [vmem:[%s301_s26 + $0x8] sm:$0xff] }
  0x17   : > { %319 = vst [vmem:[%s678_s24 + $0x38] sm:$0xff] %v632_v0  ;;  %v373_v46 = vmul.f32 %v727_v1, %v354_v33  ;;  %v401_v49 = vmax.f32 %v385_v31, 0.0  ;;  %v389_v50 = vadd.f32 %v752_v6, %v370_v32  ;;  %v374_v51 = vmul.f32 %v727_v1, %v355_v37  ;;  %s450_s27 = scalar_select %p449_p9, 1, 0 }
  0x18   : > { %320 = vst [vmem:[%s678_s24 + $0x40] sm:$0x3] %v632_v0  ;;  %v431_v52 = vmul.f32 %v727_v1, %v598_v38  ;;  %v402_v54 = vmax.f32 %v386_v35, 0.0  ;;  %v390_v55 = vadd.f32 %v752_v6, %v371_v36  ;;  %v375_v56 = vmul.f32 %v727_v1, %v356_v42  ;;  %s466_s28 = scalar_select %p465_p10, 1, 0 }
  0x19   : > { %321 = vst [vmem:[%s678_s24 + $0x48] sm:$0xff] %v632_v0  ;;  %v432_v57 = vmul.f32 %v727_v1, %v599_v43  ;;  %v403_v58 = vmax.f32 %v387_v40, 0.0  ;;  %v391_v59 = vadd.f32 %v752_v6, %v372_v41  ;;  %v376_v60 = vmul.f32 %v727_v1, %v357_v47 }
  0x1a   : > { %322 = vst [vmem:[%s678_s24 + $0x50] sm:$0xff] %v632_v0  ;;  %v459_v61 = vmul.f32 %v727_v1, %v457_v48  ;;  %v404_v62 = vmax.f32 %v388_v45, 0.0  ;;  %v392_v63 = vadd.f32 %v752_v6, %v373_v46  ;;  %v405_v2 = vmax.f32 %v389_v50, 0.0 }
  0x1b   : > { %323 = vst [vmem:[%s678_s24 + $0x58] sm:$0x3] %v632_v0  ;;  %v393_v3 = vadd.f32 %v752_v6, %v374_v51  ;;  %v433_v4 = vadd.f32 %v752_v6, %v431_v52  ;;  %v406_v5 = vmax.f32 %v390_v55, 0.0  ;;  %v394_v7 = vadd.f32 %v752_v6, %v375_v56 }
  0x1c   : > { %324 = vst [vmem:[%s678_s24 + $0x60] sm:$0xff] %v632_v0  ;;  %v434_v8 = vadd.f32 %v752_v6, %v432_v57  ;;  %v407_v9 = vmax.f32 %v391_v59, 0.0  ;;  %v451_v10 = vstv %s450_s27  ;;  %v461_v11 = vadd.f32 %v752_v6, %v459_v61 }
  0x1d   : > { %325 = vst [vmem:[%s678_s24 + $0x68] sm:$0xff] %v632_v0  ;;  %v408_v12 = vmax.f32 %v392_v63, 0.0  ;;  %v409_v14 = vmax.f32 %v393_v3, 0.0  ;;  %v435_v15 = vmax.f32 %v433_v4, 0.0  ;;  %v467_v16 = vstv %s466_s28 }
  0x1e   : > { %326 = vst [vmem:[%s678_s24 + $0x70] sm:$0x3] %v632_v0  ;;  %v410_v17 = vmax.f32 %v394_v7, 0.0  ;;  %vm452_vm0 = vcmp.eq.s32.totalorder %v451_v10, 1  ;;  %v436_v18 = vmax.f32 %v434_v8, 0.0  ;;  %v463_v20 = vmax.f32 %v461_v11, 0.0 }
  0x1f   : > { %327 = vst [vmem:[%s678_s24 + $0x78] sm:$0xff] %v632_v0  ;;  %vm468_vm1 = vcmp.eq.s32.totalorder %v467_v16, 1  ;;  %v453_v21 = vsel %vm452_vm0, 0.0, %v435_v15 }
  0x20   : > { %328 = vst [vmem:[%s678_s24 + $0x80] sm:$0xff] %v632_v0  ;;  %v454_v22 = vsel %vm452_vm0, 0.0, %v436_v18  ;;  %v469_v23 = vsel %vm468_vm1, 0.0, %v463_v20 }
  0x21   : > { %329 = vst [vmem:[%s678_s24 + $0x88] sm:$0x3] %v632_v0 }
  0x22   : > { %330 = vst [vmem:[%s678_s24 + $0x90] sm:$0xff] %v632_v0 }
  0x23   : > { %331 = vst [vmem:[%s678_s24 + $0x98] sm:$0xff] %v632_v0 }
  0x24   : > { %332 = vst [vmem:[%s678_s24 + $0xa0] sm:$0x3] %v632_v0 }
  0x25   : > { %333 = vst [vmem:[%s678_s24 + $0xa8] sm:$0xff] %v632_v0 }
  0x26   : > { %334 = vst [vmem:[%s678_s24 + $0xb0] sm:$0xff] %v632_v0 }
  0x27   : > { %335 = vst [vmem:[%s678_s24 + $0xb8] sm:$0x3] %v632_v0 }
  0x28   : > { %336 = vst [vmem:[%s678_s24 + $0xc0] sm:$0xff] %v632_v0 }
  0x29   : > { %337 = vst [vmem:[%s678_s24 + $0xc8] sm:$0xff] %v632_v0 }
  0x2a   : > { %338 = vst [vmem:[%s678_s24 + $0xd0] sm:$0x3] %v632_v0 }
  0x2b   : > { %339 = vst [vmem:[%s678_s24 + $0xd8] sm:$0xff] %v632_v0 }
  0x2c   : > { %340 = vst [vmem:[%s678_s24 + $0xe0] sm:$0xff] %v632_v0 }
  0x2d   : > { %341 = vst [vmem:[%s678_s24 + $0xe8] sm:$0x3] %v632_v0  ;;  %v460_v0 = vmul.f32 %v727_v1, %v458_v53  ;;  %v395_v1 = vadd.f32 %v752_v6, %v376_v60 }
  0x2e   : > { %582 = vst [vmem:[%s678_s24 + $0x19] sm:$0xff] %v396_v26 }
  0x2f   : > { %583 = vst [vmem:[%s678_s24 + $0x21] sm:$0xff] %v397_v30  ;;  %v462_v13 = vadd.f32 %v752_v6, %v460_v0  ;;  %v411_v19 = vmax.f32 %v395_v1, 0.0 }
  0x30   : > { %584 = vst [vmem:[%s678_s24 + $0x31] sm:$0xff] %v398_v34 }
  0x31   : > { %585 = vst [vmem:[%s678_s24 + $0x39] sm:$0xff] %v399_v39  ;;  %v464_v6 = vmax.f32 %v462_v13, 0.0 }
  0x32   : > { %586 = vst [vmem:[%s678_s24 + $0x49] sm:$0xff] %v400_v44 }
  0x33   : > { %587 = vst [vmem:[%s678_s24 + $0x51] sm:$0xff] %v401_v49  ;;  %v470_v24 = vsel %vm468_vm1, 0.0, %v464_v6 }
  0x34   : > { %588 = vst [vmem:[%s678_s24 + $0x61] sm:$0xff] %v402_v54 }
  0x35   : > { %589 = vst [vmem:[%s678_s24 + $0x69] sm:$0xff] %v403_v58 }
  0x36   : > { %590 = vst [vmem:[%s678_s24 + $0x79] sm:$0xff] %v404_v62 }
  0x37   : > { %591 = vst [vmem:[%s678_s24 + $0x81] sm:$0xff] %v405_v2 }
  0x38   : > { %592 = vst [vmem:[%s678_s24 + $0x91] sm:$0xff] %v406_v5 }
  0x39   : > { %593 = vst [vmem:[%s678_s24 + $0x99] sm:$0xff] %v407_v9 }
  0x3a   : > { %594 = vst [vmem:[%s678_s24 + $0xa9] sm:$0xff] %v408_v12 }
  0x3b   : > { %595 = vst [vmem:[%s678_s24 + $0xb1] sm:$0xff] %v409_v14 }
  0x3c   : > { %596 = vst [vmem:[%s678_s24 + $0xc1] sm:$0xff] %v410_v17 }
  0x3d   : > { %597 = vst [vmem:[%s678_s24 + $0xc9] sm:$0xff] %v411_v19 }
  0x3e   : > { %455 = vst [vmem:[%s678_s24 + $0x1] sm:$0xff] %v453_v21 }
  0x3f   : > { %456 = vst [vmem:[%s678_s24 + $0x9] sm:$0xff] %v454_v22 }
  0x40   : > { %603 = vst [vmem:[%s678_s24 + $0xd9] sm:$0xff] %v469_v23 }
  0x41   : > { %604 = vst [vmem:[%s678_s24 + $0xe1] sm:$0xff] %v470_v24 }
  0x42 PF: > { %s15_s18 = sadd.s32 1, %s630_s18  }
  0x43   : > { %p12_p11 = scmp.ge.s32.totalorder %s15_s18, 6  }
  0x45   :  { %14 = sbr.rel (!%p12_p11) target bundleno = 1 (0x1), region = 78 }

// kernel: basic_block_forward.7
= control target key start
LH: loop header
LB: loop body
LE: loop exit
PB: predicated region body
PF: predicated region fallthrough
CT: control target
= control target key end

     0   :  { %s480_s15 = smov 0   ;;  %s604_s0 = inlined_call_operand.vmem [shape: f32[4,8,16,128], index: 0, kind: input, shape index: {}]   ;;  %s605_s1 = inlined_call_operand.vmem [shape: f32[1,128], index: 1, kind: input, shape index: {}]   ;;  %s606_s2 = inlined_call_operand.vmem [shape: f32[1,128], index: 2, kind: input, shape index: {}]   ;;  %s607_s3 = inlined_call_operand.vmem [shape: f32[4,10,18,128], index: 3, kind: input, shape index: {}]   ;;  %s608_s4 = inlined_call_operand.vmem [shape: f32[4,8,16,128], index: 4, kind: output, shape index: {}]  }
   0x1 LB: > { %s406_s16 = sadd.s32 4294967295, %s453_s15   ;;  %p410_p0 = scmp.ge.s32.totalorder %s453_s15, 1  ;;  %s453_s15 = sphi %s480_s15, %s14_s15  }
   0x2   : > { %p172_p1 = scmp.lt.s32.totalorder %s453_s15, 5 }
   0x4   : > { %p173_p2 = pnand %p410_p0, %p172_p1 }
   0x5   : > { %p203_p3 = scmp.lt.s32.totalorder (!%p173_p2), %s406_s16, 3 }
   0x6   : > { %176 = sbr.rel (%p173_p2) target bundleno = 39 (0x27), region = 36 }
   0xb   : > { %s610_s16 = smov (!%p203_p3, %s406_s16), 3  ;;  %v493_v0 = vld [vmem:[%s605_s1] ss:$0 sm:$0xff] }
   0xc   : > { %s434_s19 = sshll.u32 %s610_s16, 7  ;;  %s436_s20 = smul.u32 240, %s610_s16  ;;  %v507_v1 = vld [vmem:[%s606_s2] ss:$0 sm:$0xff] }
   0xd   : > { %s502_s23 = scalar_lea.vmem %s604_s0, %s434_s19  ;;  %s543_s5 = scalar_lea.vmem %s608_s4, %s434_s19 }
   0xe   : > { %s512_s28 = scalar_lea.vmem %s607_s3, %s436_s20  ;;  %v235_v2 = vld [vmem:[%s502_s23] sm:$0xff]  ;;  %v236_v3 = vld [vmem:[%s502_s23 + $0x8] sm:$0xff]  ;;  %v237_v4 = vld [vmem:[%s502_s23 + $0x10] sm:$0xff] }
   0xf   : > { %v416_v5 = vld [vmem:[%s512_s28 + $0x19] sm:$0xff]  ;;  %v255_v6 = vmul.f32 %v493_v0, %v235_v2  ;;  %v256_v7 = vmul.f32 %v493_v0, %v236_v3  ;;  %v257_v8 = vmul.f32 %v493_v0, %v237_v4  ;;  %v417_v9 = vld [vmem:[%s512_s28 + $0x21] sm:$0xff]  ;;  %v418_v10 = vld [vmem:[%s512_s28 + $0x31] sm:$0xff] }
  0x10   : > { %v238_v11 = vld [vmem:[%s502_s23 + $0x18] sm:$0xff]  ;;  %v239_v16 = vld [vmem:[%s502_s23 + $0x20] sm:$0xff]  ;;  %v240_v17 = vld [vmem:[%s502_s23 + $0x28] sm:$0xff] }
  0x11   : > { %v275_v12 = vadd.f32 %v507_v1, %v255_v6  ;;  %v276_v13 = vadd.f32 %v507_v1, %v256_v7  ;;  %v277_v14 = vadd.f32 %v507_v1, %v257_v8  ;;  %v258_v15 = vmul.f32 %v493_v0, %v238_v11  ;;  %v419_v18 = vld [vmem:[%s512_s28 + $0x39] sm:$0xff]  ;;  %v241_v21 = vld [vmem:[%s502_s23 + $0x30] sm:$0xff]  ;;  %v244_v34 = vld [vmem:[%s502_s23 + $0x48] sm:$0xff] }
  0x12   : > { %v259_v19 = vmul.f32 %v493_v0, %v239_v16  ;;  %v260_v20 = vmul.f32 %v493_v0, %v240_v17  ;;  %v420_v26 = vld [vmem:[%s512_s28 + $0x49] sm:$0xff]  ;;  %v421_v27 = vld [vmem:[%s512_s28 + $0x51] sm:$0xff]  ;;  %v261_v31 = vmul.f32 %v493_v0, %v241_v21  ;;  %v243_v33 = vld [vmem:[%s502_s23 + $0x40] sm:$0xff]  ;;  %v264_v49 = vmul.f32 %v493_v0, %v244_v34 }
  0x13   : > { %v291_v22 = vadd.f32 %v416_v5, %v275_v12  ;;  %v292_v23 = vadd.f32 %v417_v9, %v276_v13  ;;  %v293_v24 = vadd.f32 %v418_v10, %v277_v14  ;;  %v278_v25 = vadd.f32 %v507_v1, %v258_v15  ;;  %v242_v28 = vld [vmem:[%s502_s23 + $0x38] sm:$0xff]  ;;  %v422_v39 = vld [vmem:[%s512_s28 + $0x61] sm:$0xff]  ;;  %v423_v40 = vld [vmem:[%s512_s28 + $0x69] sm:$0xff] }
  0x14   : > { %v279_v29 = vadd.f32 %v507_v1, %v259_v19  ;;  %v280_v30 = vadd.f32 %v507_v1, %v260_v20  ;;  %v262_v32 = vmul.f32 %v493_v0, %v242_v28  ;;  %v245_v41 = vld [vmem:[%s502_s23 + $0x50] sm:$0xff]  ;;  %v281_v44 = vadd.f32 %v507_v1, %v261_v31  ;;  %v246_v46 = vld [vmem:[%s502_s23 + $0x58] sm:$0xff]  ;;  %v247_v51 = vld [vmem:[%s502_s23 + $0x60] sm:$0xff] }
  0x15   : > { %v307_v35 = vmax.f32 %v291_v22, 0.0  ;;  %v308_v36 = vmax.f32 %v292_v23, 0.0  ;;  %v309_v37 = vmax.f32 %v293_v24, 0.0  ;;  %v294_v38 = vadd.f32 %v419_v18, %v278_v25  ;;  %v248_v52 = vld [vmem:[%s502_s23 + $0x68] sm:$0xff]  ;;  %v424_v57 = vld [vmem:[%s512_s28 + $0x79] sm:$0xff]  ;;  %v426_v59 = vld [vmem:[%s512_s28 + $0x91] sm:$0xff] }
  0x16   : > { %v295_v42 = vadd.f32 %v420_v26, %v279_v29  ;;  %v296_v43 = vadd.f32 %v421_v27, %v280_v30  ;;  %v282_v45 = vadd.f32 %v507_v1, %v262_v32  ;;  %v263_v48 = vmul.f32 %v493_v0, %v243_v33  ;;  %v425_v58 = vld [vmem:[%s512_s28 + $0x81] sm:$0xff]  ;;  %v249_v2 = vld [vmem:[%s502_s23 + $0x70] sm:$0xff]  ;;  %v250_v3 = vld [vmem:[%s502_s23 + $0x78] sm:$0xff] }
  0x17   : > { %323 = vst [vmem:[%s543_s5] sm:$0xff] %v307_v35  ;;  %v310_v47 = vmax.f32 %v294_v38, 0.0  ;;  %v265_v50 = vmul.f32 %v493_v0, %v245_v41  ;;  %v297_v55 = vadd.f32 %v422_v39, %v281_v44  ;;  %v284_v61 = vadd.f32 %v507_v1, %v264_v49  ;;  %v427_v6 = vld [vmem:[%s512_s28 + $0x99] sm:$0xff]  ;;  %v428_v13 = vld [vmem:[%s512_s28 + $0xa9] sm:$0xff]  ;;  %v429_v14 = vld [vmem:[%s512_s28 + $0xb1] sm:$0xff] }
  0x18   : > { %324 = vst [vmem:[%s543_s5 + $0x8] sm:$0xff] %v308_v36  ;;  %v311_v53 = vmax.f32 %v295_v42, 0.0  ;;  %v312_v54 = vmax.f32 %v296_v43, 0.0  ;;  %v298_v56 = vadd.f32 %v423_v40, %v282_v45  ;;  %v283_v60 = vadd.f32 %v507_v1, %v263_v48  ;;  %v430_v23 = vld [vmem:[%s512_s28 + $0xc1] sm:$0xff]  ;;  %v431_v24 = vld [vmem:[%s512_s28 + $0xc9] sm:$0xff] }
  0x19   : > { %325 = vst [vmem:[%s543_s5 + $0x10] sm:$0xff] %v309_v37  ;;  %v285_v62 = vadd.f32 %v507_v1, %v265_v50  ;;  %v266_v63 = vmul.f32 %v493_v0, %v246_v46  ;;  %v313_v4 = vmax.f32 %v297_v55, 0.0  ;;  %v267_v7 = vmul.f32 %v493_v0, %v247_v51 }
  0x1a   : > { %326 = vst [vmem:[%s543_s5 + $0x18] sm:$0xff] %v310_v47  ;;  %v314_v5 = vmax.f32 %v298_v56, 0.0  ;;  %v268_v8 = vmul.f32 %v493_v0, %v248_v52  ;;  %v299_v9 = vadd.f32 %v424_v57, %v283_v60  ;;  %v300_v10 = vadd.f32 %v425_v58, %v284_v61 }
  0x1b   : > { %327 = vst [vmem:[%s543_s5 + $0x20] sm:$0xff] %v311_v53  ;;  %v301_v11 = vadd.f32 %v426_v59, %v285_v62  ;;  %v286_v12 = vadd.f32 %v507_v1, %v266_v63  ;;  %v287_v15 = vadd.f32 %v507_v1, %v267_v7  ;;  %v269_v17 = vmul.f32 %v493_v0, %v249_v2 }
  0x1c   : > { %328 = vst [vmem:[%s543_s5 + $0x28] sm:$0xff] %v312_v54  ;;  %v288_v16 = vadd.f32 %v507_v1, %v268_v8  ;;  %v270_v18 = vmul.f32 %v493_v0, %v250_v3  ;;  %v315_v19 = vmax.f32 %v299_v9, 0.0  ;;  %v316_v20 = vmax.f32 %v300_v10, 0.0 }
  0x1d   : > { %329 = vst [vmem:[%s543_s5 + $0x30] sm:$0xff] %v313_v4  ;;  %v317_v21 = vmax.f32 %v301_v11, 0.0  ;;  %v302_v22 = vadd.f32 %v427_v6, %v286_v12  ;;  %v303_v25 = vadd.f32 %v428_v13, %v287_v15  ;;  %v289_v27 = vadd.f32 %v507_v1, %v269_v17 }
  0x1e   : > { %330 = vst [vmem:[%s543_s5 + $0x38] sm:$0xff] %v314_v5  ;;  %v304_v26 = vadd.f32 %v429_v14, %v288_v16  ;;  %v290_v0 = vadd.f32 %v507_v1, %v270_v18 }
  0x1f   : > { %331 = vst [vmem:[%s543_s5 + $0x40] sm:$0xff] %v315_v19  ;;  %v318_v28 = vmax.f32 %v302_v22, 0.0  ;;  %v319_v29 = vmax.f32 %v303_v25, 0.0  ;;  %v305_v31 = vadd.f32 %v430_v23, %v289_v27 }
  0x20   : > { %332 = vst [vmem:[%s543_s5 + $0x48] sm:$0xff] %v316_v20  ;;  %v320_v30 = vmax.f32 %v304_v26, 0.0  ;;  %v306_v32 = vadd.f32 %v431_v24, %v290_v0 }
  0x21   : > { %333 = vst [vmem:[%s543_s5 + $0x50] sm:$0xff] %v317_v21  ;;  %v321_v33 = vmax.f32 %v305_v31, 0.0 }
  0x22   : > { %334 = vst [vmem:[%s543_s5 + $0x58] sm:$0xff] %v318_v28  ;;  %v322_v34 = vmax.f32 %v306_v32, 0.0 }
  0x23   : > { %335 = vst [vmem:[%s543_s5 + $0x60] sm:$0xff] %v319_v29 }
  0x24   : > { %336 = vst [vmem:[%s543_s5 + $0x68] sm:$0xff] %v320_v30 }
  0x25   : > { %337 = vst [vmem:[%s543_s5 + $0x70] sm:$0xff] %v321_v33 }
  0x26   : > { %338 = vst [vmem:[%s543_s5 + $0x78] sm:$0xff] %v322_v34 }
  0x27 PF: > { %s14_s15 = sadd.s32 1, %s453_s15  }
  0x28   : > { %p11_p4 = scmp.ge.s32.totalorder %s14_s15, 6  }
  0x2a   :  { %13 = sbr.rel (!%p11_p4) target bundleno = 1 (0x1), region = 70 }

// kernel: basic_block_forward.4
= control target key start
LH: loop header
LB: loop body
LE: loop exit
PB: predicated region body
PF: predicated region fallthrough
CT: control target
= control target key end

     0   :  { %s1717_s12 = smov 0   ;;  %s2629_s0 = inlined_call_operand.vmem [shape: f32[4,10,18,128], index: 0, kind: input, shape index: {}]   ;;  %s2630_s1 = inlined_call_operand.vmem [shape: f32[1152,128], index: 1, kind: input, shape index: {}]   ;;  %s2631_s2 = inlined_call_operand.vmem [shape: f32[4,8,16,128], index: 2, kind: output, shape index: {0}]   ;;  %s2632_s3 = inlined_call_operand.vmem [shape: f32[4,2,128], index: 3, kind: output, shape index: {1}]  }
   0x1 LB: > { %s1524_s13 = sadd.s32 4294967295, %s1695_s12   ;;  %p1528_p0 = scmp.ge.s32.totalorder %s1695_s12, 1  ;;  %s1695_s12 = sphi %s1717_s12, %s14_s12  }
   0x2   : > { %p140_p1 = scmp.lt.s32.totalorder %s1695_s12, 5 }
   0x4   : > { %p141_p2 = pnand %p1528_p0, %p140_p1 }
   0x5   : > { %p168_p3 = scmp.lt.s32.totalorder (!%p141_p2), %s1524_s13, 3 }
   0x6   : > { %144 = sbr.rel (%p141_p2) target bundleno = 530 (0x212), region = 28 }
   0xb   : > { %v631_v0 = vld [vmem:[%s2630_s1 + $0x78] sm:$0xff]  ;;  %v630_v1 = vld [vmem:[%s2630_s1 + $0x70] sm:$0xff]  ;;  %v629_v2 = vld [vmem:[%s2630_s1 + $0x68] sm:$0xff]  ;;  %s2634_s13 = smov (!%p168_p3, %s1524_s13), 3 }
   0xc   : > { %1632 = vmatpush.msra.mxu1 %v631_v0  ;;  %1633 = vmatpush.msra.mxu2 %v631_v0  ;;  %v628_v3 = vld [vmem:[%s2630_s1 + $0x60] sm:$0xff]  ;;  %v627_v4 = vld [vmem:[%s2630_s1 + $0x58] sm:$0xff]  ;;  %v626_v5 = vld [vmem:[%s2630_s1 + $0x50] sm:$0xff]  ;;  %s1680_s15 = smul.u32 240, %s2634_s13  ;;  %s1631_s16 = sshll.u32 %s2634_s13, 7 }
   0xd   : > { %1634 = vmatpush.msra.mxu3 %v631_v0  ;;  %760 = vmatpush.msra.mxu0 %v631_v0  ;;  %v625_v6 = vld [vmem:[%s2630_s1 + $0x48] sm:$0xff]  ;;  %v624_v7 = vld [vmem:[%s2630_s1 + $0x40] sm:$0xff]  ;;  %v623_v8 = vld [vmem:[%s2630_s1 + $0x38] sm:$0xff]  ;;  %s2525_s19 = scalar_lea.vmem %s2631_s2, %s1631_s16 }
   0xe   : > { %1635 = vmatpush.msra.mxu1 %v630_v1  ;;  %1636 = vmatpush.msra.mxu2 %v630_v1  ;;  %v622_v9 = vld [vmem:[%s2630_s1 + $0x30] sm:$0xff]  ;;  %v621_v10 = vld [vmem:[%s2630_s1 + $0x28] sm:$0xff]  ;;  %v620_v11 = vld [vmem:[%s2630_s1 + $0x20] sm:$0xff]  ;;  %s1780_s22 = scalar_lea.vmem %s2629_s0, %s1680_s15 }
   0xf   : > { %1637 = vmatpush.msra.mxu3 %v630_v1  ;;  %761 = vmatpush.msra.mxu0 %v630_v1  ;;  %v619_v12 = vld [vmem:[%s2630_s1 + $0x18] sm:$0xff]  ;;  %v618_v13 = vld [vmem:[%s2630_s1 + $0x10] sm:$0xff]  ;;  %v617_v14 = vld [vmem:[%s2630_s1 + $0x8] sm:$0xff] }
  0x10   : > { %1638 = vmatpush.msra.mxu1 %v629_v2  ;;  %1639 = vmatpush.msra.mxu2 %v629_v2  ;;  %v616_v15 = vld [vmem:[%s2630_s1] sm:$0xff]  ;;  %v1786_v16 = vld [vmem:[%s1780_s22 + $0x30] sm:$0xff]  ;;  %v663_v18 = vld [vmem:[%s2630_s1 + $0x178] sm:$0xff] }
  0x11   : > { %1640 = vmatpush.msra.mxu3 %v629_v2  ;;  %762 = vmatpush.msra.mxu0 %v629_v2  ;;  %v1789_v17 = vld [vmem:[%s1780_s22 + $0x60] sm:$0xff]  ;;  %v647_v19 = vld [vmem:[%s2630_s1 + $0xf8] sm:$0xff]  ;;  %v1798_v20 = vld [vmem:[%s1780_s22 + $0x90] sm:$0xff] }
  0x12   : > { %1641 = vmatpush.msra.mxu1 %v628_v3  ;;  %1642 = vmatpush.msra.mxu2 %v628_v3  ;;  %v662_v21 = vld [vmem:[%s2630_s1 + $0x170] sm:$0xff]  ;;  %v679_v22 = vld [vmem:[%s2630_s1 + $0x1f8] sm:$0xff]  ;;  %v661_v24 = vld [vmem:[%s2630_s1 + $0x168] sm:$0xff] }
  0x13   : > { %1643 = vmatpush.msra.mxu3 %v628_v3  ;;  %763 = vmatpush.msra.mxu0 %v628_v3  ;;  %v646_v23 = vld [vmem:[%s2630_s1 + $0xf0] sm:$0xff]  ;;  %v645_v26 = vld [vmem:[%s2630_s1 + $0xe8] sm:$0xff]  ;;  %v182_v27 = vld [vmem:[%s1780_s22] sm:$0xff] }
  0x14   : > { %1644 = vmatpush.msra.mxu1 %v627_v4  ;;  %1645 = vmatpush.msra.mxu2 %v627_v4  ;;  %v678_v25 = vld [vmem:[%s2630_s1 + $0x1f0] sm:$0xff]  ;;  %v660_v28 = vld [vmem:[%s2630_s1 + $0x160] sm:$0xff]  ;;  %v677_v29 = vld [vmem:[%s2630_s1 + $0x1e8] sm:$0xff] }
  0x15   : > { %1646 = vmatpush.msra.mxu3 %v627_v4  ;;  %764 = vmatpush.msra.mxu0 %v627_v4  ;;  %v644_v30 = vld [vmem:[%s2630_s1 + $0xe0] sm:$0xff]  ;;  %v1832_v31 = vld [vmem:[%s1780_s22 + $0x68] sm:$0xff]  ;;  %v1835_v32 = vld [vmem:[%s1780_s22 + $0x38] sm:$0xff] }
  0x16   : > { %1647 = vmatpush.msra.mxu1 %v626_v5  ;;  %1648 = vmatpush.msra.mxu2 %v626_v5  ;;  %v659_v33 = vld [vmem:[%s2630_s1 + $0x158] sm:$0xff]  ;;  %v676_v34 = vld [vmem:[%s2630_s1 + $0x1e0] sm:$0xff]  ;;  %v658_v37 = vld [vmem:[%s2630_s1 + $0x150] sm:$0xff] }
  0x17   : > { %1649 = vmatpush.msra.mxu3 %v626_v5  ;;  %765 = vmatpush.msra.mxu0 %v626_v5  ;;  %v643_v35 = vld [vmem:[%s2630_s1 + $0xd8] sm:$0xff]  ;;  %v642_v40 = vld [vmem:[%s2630_s1 + $0xd0] sm:$0xff]  ;;  %v657_v41 = vld [vmem:[%s2630_s1 + $0x148] sm:$0xff] }
  0x18   : > { %1650 = vmatpush.msra.mxu1 %v625_v6  ;;  %1651 = vmatpush.msra.mxu2 %v625_v6  ;;  %v1848_v36 = vld [vmem:[%s1780_s22 + $0x98] sm:$0xff]  ;;  %v674_v42 = vld [vmem:[%s2630_s1 + $0x1d0] sm:$0xff]  ;;  %v641_v44 = vld [vmem:[%s2630_s1 + $0xc8] sm:$0xff] }
  0x19   : > { %1652 = vmatpush.msra.mxu3 %v625_v6  ;;  %766 = vmatpush.msra.mxu0 %v625_v6  ;;  %v675_v38 = vld [vmem:[%s2630_s1 + $0x1d8] sm:$0xff]  ;;  %v694_v43 = vld [vmem:[%s2630_s1 + $0x270] sm:$0xff]  ;;  %v656_v45 = vld [vmem:[%s2630_s1 + $0x140] sm:$0xff] }
  0x1a   : > { %1653 = vmatpush.msra.mxu1 %v624_v7  ;;  %1654 = vmatpush.msra.mxu2 %v624_v7  ;;  %v695_v39 = vld [vmem:[%s2630_s1 + $0x278] sm:$0xff]  ;;  %v673_v46 = vld [vmem:[%s2630_s1 + $0x1c8] sm:$0xff]  ;;  %v640_v48 = vld [vmem:[%s2630_s1 + $0xc0] sm:$0xff] }
  0x1b   : > { %1655 = vmatpush.msra.mxu3 %v624_v7  ;;  %767 = vmatpush.msra.mxu0 %v624_v7  ;;  %v693_v47 = vld [vmem:[%s2630_s1 + $0x268] sm:$0xff]  ;;  %v1889_v49 = vld [vmem:[%s1780_s22 + $0x78] sm:$0xff]  ;;  %v672_v52 = vld [vmem:[%s2630_s1 + $0x1c0] sm:$0xff] }
  0x1c   : > { %1656 = vmatpush.msra.mxu1 %v623_v8  ;;  %1657 = vmatpush.msra.mxu2 %v623_v8  ;;  %v1892_v50 = vld [vmem:[%s1780_s22 + $0x48] sm:$0xff]  ;;  %v655_v51 = vld [vmem:[%s2630_s1 + $0x138] sm:$0xff]  ;;  %v692_v53 = vld [vmem:[%s2630_s1 + $0x260] sm:$0xff] }
  0x1d   : > { %1658 = vmatpush.msra.mxu3 %v623_v8  ;;  %768 = vmatpush.msra.mxu0 %v623_v8  ;;  %v639_v54 = vld [vmem:[%s2630_s1 + $0xb8] sm:$0xff]  ;;  %v183_v55 = vld [vmem:[%s1780_s22 + $0x8] sm:$0xff]  ;;  %v654_v57 = vld [vmem:[%s2630_s1 + $0x130] sm:$0xff] }
  0x1e   : > { %1659 = vmatpush.msra.mxu1 %v622_v9  ;;  %1660 = vmatpush.msra.mxu2 %v622_v9  ;;  %v1910_v56 = vld [vmem:[%s1780_s22 + $0xa8] sm:$0xff]  ;;  %v671_v58 = vld [vmem:[%s2630_s1 + $0x1b8] sm:$0xff]  ;;  %v638_v60 = vld [vmem:[%s2630_s1 + $0xb0] sm:$0xff] }
  0x1f   : > { %1661 = vmatpush.msra.mxu3 %v622_v9  ;;  %769 = vmatpush.msra.mxu0 %v622_v9  ;;  %v691_v59 = vld [vmem:[%s2630_s1 + $0x258] sm:$0xff]  ;;  %v653_v61 = vld [vmem:[%s2630_s1 + $0x128] sm:$0xff]  ;;  %v670_v62 = vld [vmem:[%s2630_s1 + $0x1b0] sm:$0xff] }
  0x20   : > { %1662 = vmatpush.msra.mxu1 %v621_v10  ;;  %1663 = vmatpush.msra.mxu2 %v621_v10  ;;  %v690_v63 = vld [vmem:[%s2630_s1 + $0x250] sm:$0xff]  ;;  %v637_v0 = vld [vmem:[%s2630_s1 + $0xa8] sm:$0xff]  ;;  %v652_v1 = vld [vmem:[%s2630_s1 + $0x120] sm:$0xff] }
  0x21   : > { %1664 = vmatpush.msra.mxu3 %v621_v10  ;;  %770 = vmatpush.msra.mxu0 %v621_v10  ;;  %v669_v2 = vld [vmem:[%s2630_s1 + $0x1a8] sm:$0xff]  ;;  %v636_v4 = vld [vmem:[%s2630_s1 + $0xa0] sm:$0xff]  ;;  %v1953_v6 = vld [vmem:[%s1780_s22 + $0x50] sm:$0xff] }
  0x22   : > { %1665 = vmatpush.msra.mxu1 %v620_v11  ;;  %1666 = vmatpush.msra.mxu2 %v620_v11  ;;  %v689_v3 = vld [vmem:[%s2630_s1 + $0x248] sm:$0xff]  ;;  %v1950_v5 = vld [vmem:[%s1780_s22 + $0x80] sm:$0xff]  ;;  %v651_v7 = vld [vmem:[%s2630_s1 + $0x118] sm:$0xff] }
  0x23   : > { %1667 = vmatpush.msra.mxu3 %v620_v11  ;;  %771 = vmatpush.msra.mxu0 %v620_v11  ;;  %v668_v8 = vld [vmem:[%s2630_s1 + $0x1a0] sm:$0xff]  ;;  %v635_v10 = vld [vmem:[%s2630_s1 + $0x98] sm:$0xff] }
  0x24   : > { %1668 = vmatpush.msra.mxu1 %v619_v12  ;;  %1669 = vmatpush.msra.mxu2 %v619_v12  ;;  %v688_v9 = vld [vmem:[%s2630_s1 + $0x240] sm:$0xff]  ;;  %v184_v11 = vld [vmem:[%s1780_s22 + $0x18] sm:$0xff] }
  0x25   : > { %1670 = vmatpush.msra.mxu3 %v619_v12  ;;  %772 = vmatpush.msra.mxu0 %v619_v12  ;;  %v1971_v12 = vld [vmem:[%s1780_s22 + $0xb0] sm:$0xff] }
  0x26   : > { %1671 = vmatpush.msra.mxu1 %v618_v13  ;;  %1672 = vmatpush.msra.mxu2 %v618_v13 }
  0x27   : > { %1673 = vmatpush.msra.mxu3 %v618_v13  ;;  %773 = vmatpush.msra.mxu0 %v618_v13  ;;  %v650_v13 = vld [vmem:[%s2630_s1 + $0x110] sm:$0xff] }
  0x28   : > { %1674 = vmatpush.msra.mxu1 %v617_v14  ;;  %1675 = vmatpush.msra.mxu2 %v617_v14 }
  0x29   : > { %1676 = vmatpush.msra.mxu3 %v617_v14  ;;  %774 = vmatpush.msra.mxu0 %v617_v14  ;;  %v667_v14 = vld [vmem:[%s2630_s1 + $0x198] sm:$0xff] }
  0x2a   : > { %1677 = vmatpush.msra.mxu1 %v616_v15  ;;  %1678 = vmatpush.msra.mxu2 %v616_v15 }
  0x2b   : > { %788 = vmatmul.f32.vlgmr.msra.gmra.mxu1 %v1786_v16  ;;  %800 = vmatmul.f32.vlgmr.msra.gmra.mxu2 %v1789_v17 }
  0x2c   : > { %890 = vmatpush.msrb.mxu2 %v663_v18  ;;  %1679 = vmatpush.msra.mxu3 %v616_v15  ;;  %v634_v18 = vld [vmem:[%s2630_s1 + $0x90] sm:$0xff] }
  0x2d   : > { %825 = vmatpush.msrb.mxu1 %v647_v19  ;;  %812 = vmatmul.f32.vlgmr.msra.gmra.mxu3 %v1798_v20  ;;  %v649_v19 = vld [vmem:[%s2630_s1 + $0x108] sm:$0xff] }
  0x2e   : > { %891 = vmatpush.msrb.mxu2 %v662_v21  ;;  %955 = vmatpush.msrb.mxu3 %v679_v22  ;;  %v666_v21 = vld [vmem:[%s2630_s1 + $0x190] sm:$0xff] }
  0x2f   : > { %826 = vmatpush.msrb.mxu1 %v646_v23  ;;  %775 = vmatpush.msra.mxu0 %v616_v15  ;;  %v687_v15 = vld [vmem:[%s2630_s1 + $0x238] sm:$0xff]  ;;  %v686_v22 = vld [vmem:[%s2630_s1 + $0x230] sm:$0xff]  ;;  %v633_v23 = vld [vmem:[%s2630_s1 + $0x88] sm:$0xff] }
  0x30   : > { %892 = vmatpush.msrb.mxu2 %v661_v24  ;;  %956 = vmatpush.msrb.mxu3 %v678_v25  ;;  %v648_v24 = vld [vmem:[%s2630_s1 + $0x100] sm:$0xff]  ;;  %v665_v25 = vld [vmem:[%s2630_s1 + $0x188] sm:$0xff] }
  0x31   : > { %827 = vmatpush.msrb.mxu1 %v645_v26  ;;  %776 = vmatmul.f32.vlgmr.msra.gmra.mxu0 %v182_v27  ;;  %v685_v26 = vld [vmem:[%s2630_s1 + $0x228] sm:$0xff]  ;;  %v632_v27 = vld [vmem:[%s2630_s1 + $0x80] sm:$0xff] }
  0x32   : > { %893 = vmatpush.msrb.mxu2 %v660_v28  ;;  %957 = vmatpush.msrb.mxu3 %v677_v29  ;;  %v246_v28 = vld [vmem:[%s1780_s22 + $0x2] sm:$0xff] }
  0x33   : > { %828 = vmatpush.msrb.mxu1 %v644_v30  ;;  %803 = vmatmul.f32.gmra.mxu2 %v1832_v31  ;;  %v214_v29 = vld [vmem:[%s1780_s22 + $0x1] sm:$0xff] }
  0x34   : > { %791 = vmatmul.f32.gmra.mxu1 %v1835_v32  ;;  %894 = vmatpush.msrb.mxu2 %v659_v33  ;;  %v664_v30 = vld [vmem:[%s2630_s1 + $0x180] sm:$0xff] }
  0x35   : > { %958 = vmatpush.msrb.mxu3 %v676_v34  ;;  %829 = vmatpush.msrb.mxu1 %v643_v35  ;;  %v684_v33 = vld [vmem:[%s2630_s1 + $0x220] sm:$0xff]  ;;  %v727_v34 = vld [vmem:[%s2630_s1 + $0x378] sm:$0xff] }
  0x36   : > { %815 = vmatmul.f32.gmra.mxu3 %v1848_v36  ;;  %895 = vmatpush.msrb.mxu2 %v658_v37  ;;  %v185_v35 = vld [vmem:[%s1780_s22 + $0x20] sm:$0xff]  ;;  %v683_v37 = vld [vmem:[%s2630_s1 + $0x218] sm:$0xff] }
  0x37   : > { %959 = vmatpush.msrb.mxu3 %v675_v38  ;;  %1020 = vmatpush.msrb.mxu0 %v695_v39  ;;  %v743_v38 = vld [vmem:[%s2630_s1 + $0x3f8] sm:$0xff] }
  0x38   : > { %830 = vmatpush.msrb.mxu1 %v642_v40  ;;  %896 = vmatpush.msrb.mxu2 %v657_v41  ;;  %v711_v39 = vld [vmem:[%s2630_s1 + $0x2f8] sm:$0xff]  ;;  %v726_v40 = vld [vmem:[%s2630_s1 + $0x370] sm:$0xff] }
  0x39   : > { %960 = vmatpush.msrb.mxu3 %v674_v42  ;;  %1021 = vmatpush.msrb.mxu0 %v694_v43  ;;  %v682_v41 = vld [vmem:[%s2630_s1 + $0x210] sm:$0xff] }
  0x3a   : > { %831 = vmatpush.msrb.mxu1 %v641_v44  ;;  %897 = vmatpush.msrb.mxu2 %v656_v45  ;;  %v742_v42 = vld [vmem:[%s2630_s1 + $0x3f0] sm:$0xff]  ;;  %v725_v44 = vld [vmem:[%s2630_s1 + $0x368] sm:$0xff] }
  0x3b   : > { %961 = vmatpush.msrb.mxu3 %v673_v46  ;;  %1022 = vmatpush.msrb.mxu0 %v693_v47  ;;  %v710_v43 = vld [vmem:[%s2630_s1 + $0x2f0] sm:$0xff]  ;;  %v681_v45 = vld [vmem:[%s2630_s1 + $0x208] sm:$0xff] }
  0x3c   : > { %832 = vmatpush.msrb.mxu1 %v640_v48  ;;  %806 = vmatmul.f32.gmra.mxu2 %v1889_v49  ;;  %v247_v46 = vld [vmem:[%s1780_s22 + $0xa] sm:$0xff] }
  0x3d   : > { %794 = vmatmul.f32.gmra.mxu1 %v1892_v50  ;;  %898 = vmatpush.msrb.mxu2 %v655_v51  ;;  %v215_v47 = vld [vmem:[%s1780_s22 + $0x9] sm:$0xff]  ;;  %v680_v51 = vld [vmem:[%s2630_s1 + $0x200] sm:$0xff] }
  0x3e   : > { %962 = vmatpush.msrb.mxu3 %v672_v52  ;;  %1023 = vmatpush.msrb.mxu0 %v692_v53  ;;  %v741_v48 = vld [vmem:[%s2630_s1 + $0x3e8] sm:$0xff]  ;;  %v1549_v53 = vld [vmem:[%s1780_s22 + $0x19] sm:$0xff] }
  0x3f   : > { %833 = vmatpush.msrb.mxu1 %v639_v54  ;;  %779 = vmatmul.f32.gmra.mxu0 %v183_v55  ;;  %v709_v52 = vld [vmem:[%s2630_s1 + $0x2e8] sm:$0xff]  ;;  %v759_v54 = vld [vmem:[%s2630_s1 + $0x478] sm:$0xff]  ;;  %v724_v55 = vld [vmem:[%s2630_s1 + $0x360] sm:$0xff] }
  0x40   : > { %818 = vmatmul.f32.gmra.mxu3 %v1910_v56  ;;  %899 = vmatpush.msrb.mxu2 %v654_v57  ;;  %v740_v57 = vld [vmem:[%s2630_s1 + $0x3e0] sm:$0xff] }
  0x41   : > { %963 = vmatpush.msrb.mxu3 %v671_v58  ;;  %1024 = vmatpush.msrb.mxu0 %v691_v59  ;;  %v708_v58 = vld [vmem:[%s2630_s1 + $0x2e0] sm:$0xff]  ;;  %v758_v59 = vld [vmem:[%s2630_s1 + $0x470] sm:$0xff] }
  0x42   : > { %834 = vmatpush.msrb.mxu1 %v638_v60  ;;  %900 = vmatpush.msrb.mxu2 %v653_v61  ;;  %v723_v60 = vld [vmem:[%s2630_s1 + $0x358] sm:$0xff] }
  0x43   : > { %964 = vmatpush.msrb.mxu3 %v670_v62  ;;  %1025 = vmatpush.msrb.mxu0 %v690_v63  ;;  %v739_v61 = vld [vmem:[%s2630_s1 + $0x3d8] sm:$0xff] }
  0x44   : > { %835 = vmatpush.msrb.mxu1 %v637_v0  ;;  %901 = vmatpush.msrb.mxu2 %v652_v1  ;;  %v707_v62 = vld [vmem:[%s2630_s1 + $0x2d8] sm:$0xff]  ;;  %v757_v0 = vld [vmem:[%s2630_s1 + $0x468] sm:$0xff]  ;;  %v722_v1 = vld [vmem:[%s2630_s1 + $0x350] sm:$0xff] }
  0x45   : > { %965 = vmatpush.msrb.mxu3 %v669_v2  ;;  %1026 = vmatpush.msrb.mxu0 %v689_v3  ;;  %v2086_v63 = vld [vmem:[%s1780_s22 + $0x1a] sm:$0xff]  ;;  %v738_v3 = vld [vmem:[%s2630_s1 + $0x3d0] sm:$0xff] }
  0x46   : > { %836 = vmatpush.msrb.mxu1 %v636_v4  ;;  %809 = vmatmul.f32.gmra.mxu2 %v1950_v5  ;;  %v756_v2 = vld [vmem:[%s2630_s1 + $0x460] sm:$0xff] }
  0x47   : > { %797 = vmatmul.f32.gmra.mxu1 %v1953_v6  ;;  %902 = vmatpush.msrb.mxu2 %v651_v7  ;;  %v1550_v4 = vld [vmem:[%s1780_s22 + $0x21] sm:$0xff]  ;;  %v755_v7 = vld [vmem:[%s2630_s1 + $0x458] sm:$0xff] }
  0x48   : > { %966 = vmatpush.msrb.mxu3 %v668_v8  ;;  %1027 = vmatpush.msrb.mxu0 %v688_v9  ;;  %v706_v8 = vld [vmem:[%s2630_s1 + $0x2d0] sm:$0xff]  ;;  %v721_v9 = vld [vmem:[%s2630_s1 + $0x348] sm:$0xff] }
  0x49   : > { %837 = vmatpush.msrb.mxu1 %v635_v10  ;;  %782 = vmatmul.f32.gmra.mxu0 %v184_v11  ;;  %v737_v10 = vld [vmem:[%s2630_s1 + $0x3c8] sm:$0xff] }
  0x4a   : > { %821 = vmatmul.f32.gmra.mxu3 %v1971_v12  ;;  %903 = vmatpush.msrb.mxu2 %v650_v13  ;;  %v705_v13 = vld [vmem:[%s2630_s1 + $0x2c8] sm:$0xff] }
  0x4b   : > { %967 = vmatpush.msrb.mxu3 %v667_v14  ;;  %1028 = vmatpush.msrb.mxu0 %v687_v15  ;;  %v2122_v14 = vld [vmem:[%s1780_s22 + $0x22] sm:$0xff]  ;;  %v2126_v15 = vld [vmem:[%s1780_s22 + $0x31] sm:$0xff] }
  0x4c   : > { %838 = vmatpush.msrb.mxu1 %v634_v18  ;;  %904 = vmatpush.msrb.mxu2 %v649_v19  ;;  %v720_v18 = vld [vmem:[%s2630_s1 + $0x340] sm:$0xff] }
  0x4d   : > { %968 = vmatpush.msrb.mxu3 %v666_v21  ;;  %1029 = vmatpush.msrb.mxu0 %v686_v22  ;;  %v736_v19 = vld [vmem:[%s2630_s1 + $0x3c0] sm:$0xff]  ;;  %v753_v21 = vld [vmem:[%s2630_s1 + $0x448] sm:$0xff] }
  0x4e   : > { %839 = vmatpush.msrb.mxu1 %v633_v23  ;;  %905 = vmatpush.msrb.mxu2 %v648_v24  ;;  %v704_v22 = vld [vmem:[%s2630_s1 + $0x2c0] sm:$0xff]  ;;  %v2143_v23 = vld [vmem:[%s1780_s22 + $0x32] sm:$0xff] }
  0x4f   : > { %969 = vmatpush.msrb.mxu3 %v665_v25  ;;  %1030 = vmatpush.msrb.mxu0 %v685_v26  ;;  %v2147_v24 = vld [vmem:[%s1780_s22 + $0x39] sm:$0xff] }
  0x50   : > { %840 = vmatpush.msrb.mxu1 %v632_v27  ;;  %906 = vmatmul.f32.vlgmr.msrb.gmra.mxu2 %v246_v28  ;;  %v719_v25 = vld [vmem:[%s2630_s1 + $0x338] sm:$0xff]  ;;  %v752_v27 = vld [vmem:[%s2630_s1 + $0x440] sm:$0xff] }
  0x51   : > { %841 = vmatmul.f32.vlgmr.msrb.gmra.mxu1 %v214_v29  ;;  %970 = vmatpush.msrb.mxu3 %v664_v30  ;;  %v735_v26 = vld [vmem:[%s2630_s1 + $0x3b8] sm:$0xff]  ;;  %v2169_v30 = vld [vmem:[%s1780_s22 + $0x49] sm:$0xff] }
  0x52   : > { %1031 = vmatpush.msrb.mxu0 %v684_v33  ;;  %1150 = vmatpush.msra.mxu2 %v727_v34  ;;  %v703_v28 = vld [vmem:[%s2630_s1 + $0x2b8] sm:$0xff]  ;;  %v718_v33 = vld [vmem:[%s2630_s1 + $0x330] sm:$0xff] }
  0x53   : > { %785 = vmatmul.f32.gmra.mxu0 %v185_v35  ;;  %971 = vmatmul.f32.vlgmr.msrb.gmra.mxu3 %v184_v11  ;;  %v754_v11 = vld [vmem:[%s2630_s1 + $0x450] sm:$0xff]  ;;  %v2165_v29 = vld [vmem:[%s1780_s22 + $0x3a] sm:$0xff] }
  0x54   : > { %1032 = vmatpush.msrb.mxu0 %v683_v37  ;;  %1215 = vmatpush.msra.mxu3 %v743_v38  ;;  %v734_v34 = vld [vmem:[%s2630_s1 + $0x3b0] sm:$0xff] }
  0x55   : > { %1085 = vmatpush.msra.mxu1 %v711_v39  ;;  %1151 = vmatpush.msra.mxu2 %v726_v40  ;;  %v702_v37 = vld [vmem:[%s2630_s1 + $0x2b0] sm:$0xff]  ;;  %v717_v40 = vld [vmem:[%s2630_s1 + $0x328] sm:$0xff] }
  0x56   : > { %1033 = vmatpush.msrb.mxu0 %v682_v41  ;;  %1216 = vmatpush.msra.mxu3 %v742_v42  ;;  %v2187_v38 = vld [vmem:[%s1780_s22 + $0x4a] sm:$0xff] }
  0x57   : > { %1086 = vmatpush.msra.mxu1 %v710_v43  ;;  %1152 = vmatpush.msra.mxu2 %v725_v44  ;;  %v2191_v39 = vld [vmem:[%s1780_s22 + $0x51] sm:$0xff]  ;;  %v733_v41 = vld [vmem:[%s2630_s1 + $0x3a8] sm:$0xff] }
  0x58   : > { %1034 = vmatpush.msrb.mxu0 %v681_v45  ;;  %909 = vmatmul.f32.gmra.mxu2 %v247_v46  ;;  %v750_v42 = vld [vmem:[%s2630_s1 + $0x430] sm:$0xff]  ;;  %v701_v43 = vld [vmem:[%s2630_s1 + $0x2a8] sm:$0xff]  ;;  %v716_v46 = vld [vmem:[%s2630_s1 + $0x320] sm:$0xff] }
  0x59   : > { %844 = vmatmul.f32.gmra.mxu1 %v215_v47  ;;  %1217 = vmatpush.msra.mxu3 %v741_v48  ;;  %v2209_v44 = vld [vmem:[%s1780_s22 + $0x52] sm:$0xff]  ;;  %v2213_v45 = vld [vmem:[%s1780_s22 + $0x61] sm:$0xff] }
  0x5a   : > { %1035 = vmatpush.msrb.mxu0 %v680_v51  ;;  %1087 = vmatpush.msra.mxu1 %v709_v52  ;;  %v732_v47 = vld [vmem:[%s2630_s1 + $0x3a0] sm:$0xff]  ;;  %v749_v48 = vld [vmem:[%s2630_s1 + $0x428] sm:$0xff] }
  0x5b   : > { %974 = vmatmul.f32.gmra.mxu3 %v185_v35  ;;  %1036 = vmatmul.f32.vlgmr.msrb.gmra.mxu0 %v1549_v53  ;;  %v751_v35 = vld [vmem:[%s2630_s1 + $0x438] sm:$0xff]  ;;  %v700_v51 = vld [vmem:[%s2630_s1 + $0x2a0] sm:$0xff] }
  0x5c   : > { %1280 = vmatpush.msra.mxu0 %v759_v54  ;;  %1153 = vmatpush.msra.mxu2 %v724_v55  ;;  %v2231_v52 = vld [vmem:[%s1780_s22 + $0x62] sm:$0xff]  ;;  %v715_v54 = vld [vmem:[%s2630_s1 + $0x318] sm:$0xff] }
  0x5d   : > { %1218 = vmatpush.msra.mxu3 %v740_v57  ;;  %1088 = vmatpush.msra.mxu1 %v708_v58  ;;  %v731_v55 = vld [vmem:[%s2630_s1 + $0x398] sm:$0xff]  ;;  %v748_v57 = vld [vmem:[%s2630_s1 + $0x420] sm:$0xff] }
  0x5e   : > { %1281 = vmatpush.msra.mxu0 %v758_v59  ;;  %1154 = vmatpush.msra.mxu2 %v723_v60  ;;  %v699_v58 = vld [vmem:[%s2630_s1 + $0x298] sm:$0xff]  ;;  %v2253_v59 = vld [vmem:[%s1780_s22 + $0x6a] sm:$0xff] }
  0x5f   : > { %1219 = vmatpush.msra.mxu3 %v739_v61  ;;  %1089 = vmatpush.msra.mxu1 %v707_v62  ;;  %v2257_v60 = vld [vmem:[%s1780_s22 + $0x79] sm:$0xff]  ;;  %v714_v61 = vld [vmem:[%s2630_s1 + $0x310] sm:$0xff] }
  0x60   : > { %912 = vmatmul.f32.gmra.mxu2 %v2086_v63  ;;  %1282 = vmatpush.msra.mxu0 %v757_v0  ;;  %v730_v62 = vld [vmem:[%s2630_s1 + $0x390] sm:$0xff]  ;;  %v747_v0 = vld [vmem:[%s2630_s1 + $0x418] sm:$0xff] }
  0x61   : > { %847 = vmatmul.f32.gmra.mxu1 %v1549_v53  ;;  %1155 = vmatpush.msra.mxu2 %v722_v1  ;;  %v2235_v53 = vld [vmem:[%s1780_s22 + $0x69] sm:$0xff] }
  0x62   : > { %1283 = vmatpush.msra.mxu0 %v756_v2  ;;  %1220 = vmatpush.msra.mxu3 %v738_v3  ;;  %v698_v1 = vld [vmem:[%s2630_s1 + $0x290] sm:$0xff]  ;;  %v2275_v2 = vld [vmem:[%s1780_s22 + $0x7a] sm:$0xff] }
  0x63   : > { %977 = vmatmul.f32.gmra.mxu3 %v1786_v16  ;;  %1039 = vmatmul.f32.gmra.mxu0 %v1550_v4  ;;  %v2279_v3 = vld [vmem:[%s1780_s22 + $0x81] sm:$0xff] }
  0x64   : > { %1284 = vmatpush.msra.mxu0 %v755_v7  ;;  %1090 = vmatpush.msra.mxu1 %v706_v8  ;;  %v729_v7 = vld [vmem:[%s2630_s1 + $0x388] sm:$0xff]  ;;  %v746_v8 = vld [vmem:[%s2630_s1 + $0x410] sm:$0xff] }
  0x65   : > { %1156 = vmatpush.msra.mxu2 %v721_v9  ;;  %1221 = vmatpush.msra.mxu3 %v737_v10  ;;  %v697_v9 = vld [vmem:[%s2630_s1 + $0x288] sm:$0xff] }
  0x66   : > { %1285 = vmatpush.msra.mxu0 %v754_v11  ;;  %1091 = vmatpush.msra.mxu1 %v705_v13  ;;  %v2297_v10 = vld [vmem:[%s1780_s22 + $0x82] sm:$0xff] }
  0x67   : > { %1157 = vmatpush.msra.mxu2 %v720_v18  ;;  %1222 = vmatpush.msra.mxu3 %v736_v19  ;;  %v712_v13 = vld [vmem:[%s2630_s1 + $0x300] sm:$0xff]  ;;  %v745_v19 = vld [vmem:[%s2630_s1 + $0x408] sm:$0xff] }
  0x68   : > { %915 = vmatmul.f32.gmra.mxu2 %v2122_v14  ;;  %1286 = vmatpush.msra.mxu0 %v753_v21  ;;  %v728_v18 = vld [vmem:[%s2630_s1 + $0x380] sm:$0xff] }
  0x69   : > { %850 = vmatmul.f32.gmra.mxu1 %v1550_v4  ;;  %1158 = vmatpush.msra.mxu2 %v719_v25  ;;  %v713_v4 = vld [vmem:[%s2630_s1 + $0x308] sm:$0xff]  ;;  %v696_v21 = vld [vmem:[%s2630_s1 + $0x280] sm:$0xff] }
  0x6a   : > { %1092 = vmatpush.msra.mxu1 %v704_v22  ;;  %1223 = vmatpush.msra.mxu3 %v735_v26  ;;  %v2321_v22 = vld [vmem:[%s1780_s22 + $0x92] sm:$0xff] }
  0x6b   : > { %980 = vmatmul.f32.gmra.mxu3 %v1835_v32  ;;  %1042 = vmatmul.f32.gmra.mxu0 %v2126_v15  ;;  %v2327_v25 = vld [vmem:[%s1780_s22 + $0x99] sm:$0xff] }
  0x6c   : > { %1287 = vmatpush.msra.mxu0 %v752_v27  ;;  %1093 = vmatpush.msra.mxu1 %v703_v28 }
  0x6d   : > { %1159 = vmatpush.msra.mxu2 %v718_v33  ;;  %1224 = vmatpush.msra.mxu3 %v734_v34  ;;  %v744_v33 = vld [vmem:[%s2630_s1 + $0x400] sm:$0xff] }
  0x6e   : > { %1288 = vmatpush.msra.mxu0 %v751_v35  ;;  %1094 = vmatpush.msra.mxu1 %v702_v37  ;;  %v2340_v34 = vld [vmem:[%s1780_s22 + $0x9a] sm:$0xff]  ;;  %v2346_v37 = vld [vmem:[%s1780_s22 + $0xa9] sm:$0xff] }
  0x6f   : > { %1160 = vmatpush.msra.mxu2 %v717_v40  ;;  %1225 = vmatpush.msra.mxu3 %v733_v41 }
  0x70   : > { %918 = vmatmul.f32.gmra.mxu2 %v2143_v23  ;;  %1289 = vmatpush.msra.mxu0 %v750_v42  ;;  %v2356_v42 = vld [vmem:[%s1780_s22 + $0xaa] sm:$0xff] }
  0x71   : > { %853 = vmatmul.f32.gmra.mxu1 %v2126_v15  ;;  %1161 = vmatpush.msra.mxu2 %v716_v46  ;;  %v2362_v46 = vld [vmem:[%s1780_s22 + $0xc0] sm:$0xff] }
  0x72   : > { %1095 = vmatpush.msra.mxu1 %v701_v43  ;;  %1226 = vmatpush.msra.mxu3 %v732_v47  ;;  %v2365_v47 = vld [vmem:[%s1780_s22 + $0xb1] sm:$0xff] }
  0x73   : > { %983 = vmatmul.f32.gmra.mxu3 %v1892_v50  ;;  %1045 = vmatmul.f32.gmra.mxu0 %v2147_v24 }
  0x74   : > { %1290 = vmatpush.msra.mxu0 %v749_v48  ;;  %1096 = vmatpush.msra.mxu1 %v700_v51 }
  0x75   : > { %1162 = vmatpush.msra.mxu2 %v715_v54  ;;  %1227 = vmatpush.msra.mxu3 %v731_v55  ;;  %v2375_v54 = vld [vmem:[%s1780_s22 + $0xb2] sm:$0xff] }
  0x76   : > { %1291 = vmatpush.msra.mxu0 %v748_v57  ;;  %1097 = vmatpush.msra.mxu1 %v699_v58  ;;  %v2379_v57 = vld [vmem:[%s1780_s22 + $0xc8] sm:$0xff] }
  0x77   : > { %1163 = vmatpush.msra.mxu2 %v714_v61  ;;  %1228 = vmatpush.msra.mxu3 %v730_v62  ;;  %v2382_v58 = vld [vmem:[%s1780_s22 + $0xc1] sm:$0xff] }
  0x78   : > { %921 = vmatmul.f32.gmra.mxu2 %v2165_v29  ;;  %1292 = vmatpush.msra.mxu0 %v747_v0 }
  0x79   : > { %856 = vmatmul.f32.gmra.mxu1 %v2147_v24  ;;  %1164 = vmatpush.msra.mxu2 %v713_v4  ;;  %v2393_v4 = vld [vmem:[%s1780_s22 + $0xc9] sm:$0xff] }
  0x7a   : > { %1098 = vmatpush.msra.mxu1 %v698_v1  ;;  %1229 = vmatpush.msra.mxu3 %v729_v7 }
  0x7b   : > { %986 = vmatmul.f32.gmra.mxu3 %v1953_v6  ;;  %1048 = vmatmul.f32.gmra.mxu0 %v2169_v30 }
  0x7c   : > { %1293 = vmatpush.msra.mxu0 %v746_v8  ;;  %1099 = vmatpush.msra.mxu1 %v697_v9 }
  0x7d   : > { %1165 = vmatpush.msra.mxu2 %v712_v13  ;;  %1230 = vmatpush.msra.mxu3 %v728_v18 }
  0x7e   : > { %1294 = vmatpush.msra.mxu0 %v745_v19  ;;  %1100 = vmatpush.msra.mxu1 %v696_v21 }
  0x80   : > { %924 = vmatmul.f32.gmra.mxu2 %v2187_v38  ;;  %1295 = vmatpush.msra.mxu0 %v744_v33 }
  0x81   : > { %859 = vmatmul.f32.gmra.mxu1 %v2169_v30 }
  0x83   : > { %989 = vmatmul.f32.gmra.mxu3 %v1789_v17  ;;  %1051 = vmatmul.f32.gmra.mxu0 %v2191_v39 }
  0x88   : > { %927 = vmatmul.f32.gmra.mxu2 %v2209_v44 }
  0x89   : > { %862 = vmatmul.f32.gmra.mxu1 %v2191_v39 }
  0x8b   : > { %992 = vmatmul.f32.gmra.mxu3 %v1832_v31  ;;  %1054 = vmatmul.f32.gmra.mxu0 %v2213_v45 }
  0x90   : > { %930 = vmatmul.f32.gmra.mxu2 %v2231_v52 }
  0x91   : > { %865 = vmatmul.f32.gmra.mxu1 %v2213_v45 }
  0x93   : > { %995 = vmatmul.f32.gmra.mxu3 %v1889_v49  ;;  %1057 = vmatmul.f32.gmra.mxu0 %v2235_v53 }
  0x98   : > { %933 = vmatmul.f32.gmra.mxu2 %v2253_v59 }
  0x99   : > { %868 = vmatmul.f32.gmra.mxu1 %v2235_v53 }
  0x9b   : > { %998 = vmatmul.f32.gmra.mxu3 %v1950_v5  ;;  %1060 = vmatmul.f32.gmra.mxu0 %v2257_v60 }
  0xa0   : > { %936 = vmatmul.f32.gmra.mxu2 %v2275_v2 }
  0xa1   : > { %871 = vmatmul.f32.gmra.mxu1 %v2257_v60 }
  0xa3   : > { %1001 = vmatmul.f32.gmra.mxu3 %v1798_v20  ;;  %1063 = vmatmul.f32.gmra.mxu0 %v2279_v3  ;;  %v2301_v20 = vld [vmem:[%s1780_s22 + $0x91] sm:$0xff] }
  0xa8   : > { %939 = vmatmul.f32.gmra.mxu2 %v2297_v10  ;;  %v2303_v11 = vpop.f32.mrf.mxu1 }
  0xa9   : > { %874 = vmatmul.f32.gmra.mxu1 %v2279_v3 }
  0xab   : > { %1004 = vmatmul.f32.gmra.mxu3 %v1848_v36  ;;  %1066 = vmatmul.f32.gmra.mxu0 %v2301_v20 }
  0xae   : > { %v2323_v36 = vpop.f32.mrf.mxu2  ;;  %v777_v28 = vpop.f32.mrf.mxu0 }
  0xb0   : > { %942 = vmatmul.f32.gmra.mxu2 %v2321_v22  ;;  %v2329_v26 = vpop.f32.mrf.mxu3 }
  0xb1   : > { %877 = vmatmul.f32.gmra.mxu1 %v2301_v20  ;;  %v2332_v27 = vpop.f32.mrf.mxu1 }
  0xb3   : > { %1007 = vmatmul.f32.gmra.mxu3 %v1910_v56  ;;  %1069 = vmatmul.f32.gmra.mxu0 %v2327_v25 }
  0xb6   : > { %v2342_v35 = vpop.f32.mrf.mxu2 }
  0xb8   : > { %945 = vmatmul.f32.gmra.mxu2 %v2340_v34 }
  0xb9   : > { %880 = vmatmul.f32.gmra.mxu1 %v2327_v25  ;;  %v2349_v56 = vpop.f32.mrf.mxu3 }
  0xba   : > { %v2351_v40 = vpop.f32.mrf.mxu1 }
  0xbb   : > { %1010 = vmatmul.f32.gmra.mxu3 %v1971_v12  ;;  %1072 = vmatmul.f32.gmra.mxu0 %v2346_v37 }
  0xbc   : > { %v780_v41 = vpop.f32.mrf.mxu0 }
  0xbf   : > { %v2358_v43 = vpop.f32.mrf.mxu2 }
  0xc0   : > { %948 = vmatmul.f32.gmra.mxu2 %v2356_v42 }
  0xc1   : > { %883 = vmatmul.f32.gmra.mxu1 %v2346_v37 }
  0xc3   : > { %1013 = vmatmul.f32.gmra.mxu3 %v2362_v46  ;;  %1075 = vmatmul.f32.gmra.mxu0 %v2365_v47  ;;  %v2370_v48 = vpop.f32.mrf.mxu3 }
  0xc4   : > { %v2372_v51 = vpop.f32.mrf.mxu1 }
  0xc6   : > { %v783_v55 = vpop.f32.mrf.mxu0 }
  0xc8   : > { %951 = vmatmul.f32.gmra.mxu2 %v2375_v54 }
  0xc9   : > { %886 = vmatmul.f32.gmra.mxu1 %v2365_v47  ;;  %v2385_v61 = vpop.f32.mrf.mxu2 }
  0xcb   : > { %1016 = vmatmul.f32.gmra.mxu3 %v2379_v57  ;;  %1078 = vmatmul.f32.gmra.mxu0 %v2382_v58 }
  0xcd   : > { %v2389_v62 = vpop.f32.mrf.mxu3 }
  0xce   : > { %v842_v0 = vpop.f32.mrf.mxu1 }
  0xcf   : > { %v843_v7 = vadd.f32 %v842_v0, %v777_v28 }
  0xd0   : > { %v786_v1 = vpop.f32.mrf.mxu0  ;;  %1166 = vmatmul.f32.vlgmr.msra.gmra.mxu2 %v1786_v16 }
  0xd1   : > { %1101 = vmatmul.f32.vlgmr.msra.gmra.mxu1 %v2086_v63 }
  0xd3   : > { %1081 = vmatmul.f32.gmra.mxu0 %v2393_v4  ;;  %1231 = vmatmul.f32.vlgmr.msra.gmra.mxu3 %v2126_v15  ;;  %v907_v8 = vpop.f32.mrf.mxu2 }
  0xd4   : > { %v908_v9 = vadd.f32 %v907_v8, %v843_v7 }
  0xd6   : > { %v845_v13 = vpop.f32.mrf.mxu1  ;;  %v972_v18 = vpop.f32.mrf.mxu3 }
  0xd7   : > { %v2398_v19 = vadd.f32 %v972_v18, %v908_v9  ;;  %v846_v16 = vadd.f32 %v845_v13, %v780_v41 }
  0xd8   : > { %v2400_v21 = vpop.f32.mrf.mxu0  ;;  %1169 = vmatmul.f32.gmra.mxu2 %v1835_v32 }
  0xd9   : > { %1104 = vmatmul.f32.gmra.mxu1 %v2122_v14 }
  0xdb   : > { %1234 = vmatmul.f32.gmra.mxu3 %v2147_v24  ;;  %1296 = vmatmul.f32.vlgmr.msra.gmra.mxu0 %v2143_v23  ;;  %v910_v63 = vpop.f32.mrf.mxu2 }
  0xdc   : > { %v911_v28 = vadd.f32 %v910_v63, %v846_v16 }
  0xde   : > { %v848_v15 = vpop.f32.mrf.mxu1  ;;  %v975_v33 = vpop.f32.mrf.mxu3 }
  0xdf   : > { %v2406_v0 = vadd.f32 %v975_v33, %v911_v28  ;;  %v849_v32 = vadd.f32 %v848_v15, %v783_v55 }
  0xe0   : > { %v2408_v7 = vpop.f32.mrf.mxu0  ;;  %1172 = vmatmul.f32.gmra.mxu2 %v1892_v50 }
  0xe1   : > { %1107 = vmatmul.f32.gmra.mxu1 %v2143_v23 }
  0xe3   : > { %1237 = vmatmul.f32.gmra.mxu3 %v2169_v30  ;;  %1299 = vmatmul.f32.gmra.mxu0 %v2165_v29  ;;  %v913_v14 = vpop.f32.mrf.mxu2 }
  0xe4   : > { %v914_v24 = vadd.f32 %v913_v14, %v849_v32 }
  0xe6   : > { %v851_v41 = vpop.f32.mrf.mxu1  ;;  %v978_v8 = vpop.f32.mrf.mxu3 }
  0xe7   : > { %v2414_v9 = vadd.f32 %v978_v8, %v914_v24  ;;  %v852_v50 = vadd.f32 %v851_v41, %v786_v1 }
  0xe8   : > { %v2416_v13 = vpop.f32.mrf.mxu0  ;;  %1175 = vmatmul.f32.gmra.mxu2 %v1953_v6 }
  0xe9   : > { %1110 = vmatmul.f32.gmra.mxu1 %v2165_v29 }
  0xeb   : > { %1240 = vmatmul.f32.gmra.mxu3 %v2191_v39  ;;  %1302 = vmatmul.f32.gmra.mxu0 %v2187_v38  ;;  %v916_v23 = vpop.f32.mrf.mxu2 }
  0xec   : > { %v917_v30 = vadd.f32 %v916_v23, %v852_v50 }
  0xee   : > { %v854_v55 = vpop.f32.mrf.mxu1  ;;  %v981_v18 = vpop.f32.mrf.mxu3 }
  0xef   : > { %v2422_v16 = vadd.f32 %v981_v18, %v917_v30  ;;  %v855_v6 = vadd.f32 %v854_v55, %v2303_v11 }
  0xf0   : > { %v2424_v63 = vpop.f32.mrf.mxu0  ;;  %1178 = vmatmul.f32.gmra.mxu2 %v1789_v17 }
  0xf1   : > { %1113 = vmatmul.f32.gmra.mxu1 %v2187_v38 }
  0xf3   : > { %1243 = vmatmul.f32.gmra.mxu3 %v2213_v45  ;;  %1305 = vmatmul.f32.gmra.mxu0 %v2209_v44  ;;  %v919_v29 = vpop.f32.mrf.mxu2 }
  0xf4   : > { %v920_v39 = vadd.f32 %v919_v29, %v855_v6 }
  0xf6   : > { %v857_v1 = vpop.f32.mrf.mxu1  ;;  %v984_v28 = vpop.f32.mrf.mxu3 }
  0xf7   : > { %v2431_v15 = vadd.f32 %v984_v28, %v920_v39  ;;  %v858_v17 = vadd.f32 %v857_v1, %v2332_v27 }
  0xf8   : > { %v2433_v33 = vpop.f32.mrf.mxu0  ;;  %1181 = vmatmul.f32.gmra.mxu2 %v1832_v31 }
  0xf9   : > { %1116 = vmatmul.f32.gmra.mxu1 %v2209_v44 }
  0xfb   : > { %1246 = vmatmul.f32.gmra.mxu3 %v2235_v53  ;;  %1308 = vmatmul.f32.gmra.mxu0 %v2231_v52  ;;  %v922_v38 = vpop.f32.mrf.mxu2 }
  0xfc   : > { %v923_v45 = vadd.f32 %v922_v38, %v858_v17  ;;  %v1591_v17 = vld [vmem:[%s1780_s22 + $0xa8] sm:$0xff] }
  0xfe   : > { %v860_v11 = vpop.f32.mrf.mxu1  ;;  %v987_v32 = vpop.f32.mrf.mxu3 }
  0xff   : > { %v2440_v14 = vadd.f32 %v987_v32, %v923_v45  ;;  %v861_v31 = vadd.f32 %v860_v11, %v2351_v40  ;;  %v1589_v40 = vld [vmem:[%s1780_s22 + $0x90] sm:$0xff] }
 0x100   : > { %v2442_v24 = vpop.f32.mrf.mxu0  ;;  %1184 = vmatmul.f32.gmra.mxu2 %v1889_v49 }
 0x101   : > { %1119 = vmatmul.f32.gmra.mxu1 %v2231_v52 }
 0x103   : > { %1249 = vmatmul.f32.gmra.mxu3 %v2257_v60  ;;  %1311 = vmatmul.f32.gmra.mxu0 %v2253_v59  ;;  %v925_v44 = vpop.f32.mrf.mxu2 }
 0x104   : > { %v926_v53 = vadd.f32 %v925_v44, %v861_v31 }
 0x106   : > { %v863_v27 = vpop.f32.mrf.mxu1  ;;  %v990_v41 = vpop.f32.mrf.mxu3 }
 0x107   : > { %v2449_v8 = vadd.f32 %v990_v41, %v926_v53  ;;  %v864_v49 = vadd.f32 %v863_v27, %v2372_v51  ;;  %v1590_v51 = vld [vmem:[%s1780_s22 + $0x98] sm:$0xff] }
 0x108   : > { %v2451_v50 = vpop.f32.mrf.mxu0  ;;  %1187 = vmatmul.f32.gmra.mxu2 %v1950_v5 }
 0x109   : > { %1122 = vmatmul.f32.gmra.mxu1 %v2253_v59 }
 0x10b   : > { %1252 = vmatmul.f32.gmra.mxu3 %v2279_v3  ;;  %1314 = vmatmul.f32.gmra.mxu0 %v2275_v2  ;;  %v928_v52 = vpop.f32.mrf.mxu2 }
 0x10c   : > { %v929_v60 = vadd.f32 %v928_v52, %v864_v49 }
 0x10e   : > { %v866_v23 = vpop.f32.mrf.mxu1  ;;  %v993_v30 = vpop.f32.mrf.mxu3 }
 0x10f   : > { %v2459_v55 = vadd.f32 %v993_v30, %v929_v60  ;;  %v867_v5 = vadd.f32 %v866_v23, %v2323_v36 }
 0x110   : > { %v2461_v18 = vpop.f32.mrf.mxu0  ;;  %1190 = vmatmul.f32.gmra.mxu2 %v1589_v40 }
 0x111   : > { %1125 = vmatmul.f32.gmra.mxu1 %v2275_v2 }
 0x113   : > { %1255 = vmatmul.f32.gmra.mxu3 %v2301_v20  ;;  %1317 = vmatmul.f32.gmra.mxu0 %v2297_v10  ;;  %v931_v59 = vpop.f32.mrf.mxu2 }
 0x114   : > { %v932_v3 = vadd.f32 %v931_v59, %v867_v5 }
 0x116   : > { %v869_v6 = vpop.f32.mrf.mxu1  ;;  %v996_v29 = vpop.f32.mrf.mxu3 }
 0x117   : > { %v997_v39 = vadd.f32 %v996_v29, %v932_v3  ;;  %v870_v2 = vadd.f32 %v869_v6, %v2342_v35  ;;  %v1595_v6 = vld [vmem:[%s1780_s22 + $0xd8] sm:$0xff] }
 0x118   : > { %v1061_v1 = vpop.f32.mrf.mxu0  ;;  %1193 = vmatmul.f32.gmra.mxu2 %v1590_v51 }
 0x119   : > { %v2468_v28 = vadd.f32 %v1061_v1, %v997_v39  ;;  %1128 = vmatmul.f32.gmra.mxu1 %v2297_v10 }
 0x11b   : > { %1258 = vmatmul.f32.gmra.mxu3 %v2327_v25  ;;  %1320 = vmatmul.f32.gmra.mxu0 %v2321_v22  ;;  %v934_v20 = vpop.f32.mrf.mxu2 }
 0x11c   : > { %v935_v36 = vadd.f32 %v934_v20, %v870_v2  ;;  %v1626_v20 = vld [vmem:[%s1780_s22 + $0xca] sm:$0xff] }
 0x11e   : > { %v872_v38 = vpop.f32.mrf.mxu1  ;;  %v999_v45 = vpop.f32.mrf.mxu3 }
 0x11f   : > { %v1000_v11 = vadd.f32 %v999_v45, %v935_v36  ;;  %v873_v10 = vadd.f32 %v872_v38, %v2358_v43 }
 0x120   : > { %v1064_v32 = vpop.f32.mrf.mxu0  ;;  %1196 = vmatmul.f32.gmra.mxu2 %v1591_v17  ;;  %v1596_v17 = vld [vmem:[%s1780_s22 + $0xe0] sm:$0xff] }
 0x121   : > { %v2475_v31 = vadd.f32 %v1064_v32, %v1000_v11  ;;  %1131 = vmatmul.f32.gmra.mxu1 %v2321_v22 }
 0x123   : > { %1261 = vmatmul.f32.gmra.mxu3 %v2346_v37  ;;  %1323 = vmatmul.f32.gmra.mxu0 %v2340_v34  ;;  %v937_v25 = vpop.f32.mrf.mxu2 }
 0x124   : > { %v938_v35 = vadd.f32 %v937_v25, %v873_v10  ;;  %v1612_v10 = vld [vmem:[%s1780_s22 + $0xe1] sm:$0xff] }
 0x125   : > { %v1627_v25 = vld [vmem:[%s1780_s22 + $0xda] sm:$0xff] }
 0x126   : > { %v875_v44 = vpop.f32.mrf.mxu1  ;;  %v1002_v53 = vpop.f32.mrf.mxu3 }
 0x127   : > { %v1003_v27 = vadd.f32 %v1002_v53, %v938_v35  ;;  %v876_v22 = vadd.f32 %v875_v44, %v2385_v61 }
 0x128   : > { %v1067_v41 = vpop.f32.mrf.mxu0  ;;  %1199 = vmatmul.f32.gmra.mxu2 %v1971_v12 }
 0x129   : > { %v2482_v49 = vadd.f32 %v1067_v41, %v1003_v27  ;;  %1134 = vmatmul.f32.gmra.mxu1 %v2340_v34 }
 0x12b   : > { %1264 = vmatmul.f32.gmra.mxu3 %v2365_v47  ;;  %1326 = vmatmul.f32.gmra.mxu0 %v2356_v42  ;;  %v940_v37 = vpop.f32.mrf.mxu2 }
 0x12c   : > { %v941_v43 = vadd.f32 %v940_v37, %v876_v22  ;;  %v1038_v37 = vadd.f32 %v2400_v21, %v2398_v19 }
 0x12e   : > { %v878_v52 = vpop.f32.mrf.mxu1  ;;  %v1005_v60 = vpop.f32.mrf.mxu3 }
 0x12f   : > { %v1006_v40 = vadd.f32 %v1005_v60, %v941_v43  ;;  %v879_v34 = vadd.f32 %v878_v52, %v2329_v26  ;;  %v1628_v52 = vld [vmem:[%s1780_s22 + $0xe2] sm:$0xff] }
 0x130   : > { %v1070_v23 = vpop.f32.mrf.mxu0  ;;  %1202 = vmatmul.f32.gmra.mxu2 %v2362_v46  ;;  %v1625_v46 = vld [vmem:[%s1780_s22 + $0xc2] sm:$0xff] }
 0x131   : > { %v2489_v12 = vadd.f32 %v1070_v23, %v1006_v40  ;;  %1137 = vmatmul.f32.gmra.mxu1 %v2356_v42 }
 0x133   : > { %1267 = vmatmul.f32.gmra.mxu3 %v2382_v58  ;;  %1329 = vmatmul.f32.gmra.mxu0 %v2375_v54  ;;  %v943_v47 = vpop.f32.mrf.mxu2 }
 0x134   : > { %v944_v61 = vadd.f32 %v943_v47, %v879_v34 }
 0x136   : > { %v881_v30 = vpop.f32.mrf.mxu1  ;;  %v1008_v5 = vpop.f32.mrf.mxu3 }
 0x137   : > { %v1009_v59 = vadd.f32 %v1008_v5, %v944_v61  ;;  %v882_v26 = vadd.f32 %v881_v30, %v2349_v56  ;;  %v1041_v30 = vadd.f32 %v2408_v7, %v2406_v0  ;;  %v1044_v0 = vadd.f32 %v2416_v13, %v2414_v9 }
 0x138   : > { %v1073_v3 = vpop.f32.mrf.mxu0  ;;  %1205 = vmatmul.f32.gmra.mxu2 %v2379_v57  ;;  %v1611_v57 = vld [vmem:[%s1780_s22 + $0xd9] sm:$0xff]  ;;  %s1532_s22 = sshll.u32 %s2634_s13, 1 }
 0x139   : > { %v2497_v51 = vadd.f32 %v1073_v3, %v1009_v59  ;;  %1140 = vmatmul.f32.gmra.mxu1 %v2375_v54  ;;  %s2611_s23 = scalar_lea.vmem %s2632_s3, %s1532_s22 }
 0x13b   : > { %1270 = vmatmul.f32.gmra.mxu3 %v2393_v4  ;;  %1332 = vmatmul.f32.gmra.mxu0 %v1625_v46  ;;  %v946_v42 = vpop.f32.mrf.mxu2 }
 0x13c   : > { %v947_v58 = vadd.f32 %v946_v42, %v882_v26 }
 0x13e   : > { %v884_v29 = vpop.f32.mrf.mxu1  ;;  %v1011_v39 = vpop.f32.mrf.mxu3 }
 0x13f   : > { %v1012_v1 = vadd.f32 %v1011_v39, %v947_v58  ;;  %v885_v56 = vadd.f32 %v884_v29, %v2370_v48 }
 0x140   : > { %v1076_v2 = vpop.f32.mrf.mxu0  ;;  %1208 = vmatmul.f32.gmra.mxu2 %v1595_v6 }
 0x141   : > { %v2505_v36 = vadd.f32 %v1076_v2, %v1012_v1  ;;  %1143 = vmatmul.f32.gmra.mxu1 %v1625_v46 }
 0x143   : > { %1273 = vmatmul.f32.gmra.mxu3 %v1611_v57  ;;  %1335 = vmatmul.f32.gmra.mxu0 %v1626_v20  ;;  %v949_v54 = vpop.f32.mrf.mxu2 }
 0x144   : > { %v950_v4 = vadd.f32 %v949_v54, %v885_v56 }
 0x146   : > { %v887_v38 = vpop.f32.mrf.mxu1  ;;  %v1014_v45 = vpop.f32.mrf.mxu3 }
 0x147   : > { %v1015_v11 = vadd.f32 %v1014_v45, %v950_v4  ;;  %v888_v44 = vadd.f32 %v887_v38, %v2389_v62 }
 0x148   : > { %v1079_v32 = vpop.f32.mrf.mxu0  ;;  %1211 = vmatmul.f32.gmra.mxu2 %v1596_v17 }
 0x149   : > { %v2511_v35 = vadd.f32 %v1079_v32, %v1015_v11  ;;  %1146 = vmatmul.f32.gmra.mxu1 %v1626_v20  ;;  %v1047_v20 = vadd.f32 %v2424_v63, %v2422_v16  ;;  %v1050_v11 = vadd.f32 %v2433_v33, %v2431_v15 }
 0x14b   : > { %1276 = vmatmul.f32.gmra.mxu3 %v1612_v10  ;;  %1338 = vmatmul.f32.gmra.mxu0 %v1627_v25  ;;  %v952_v48 = vpop.f32.mrf.mxu2 }
 0x14c   : > { %v953_v53 = vadd.f32 %v952_v48, %v888_v44 }
 0x14e   : > { %v1017_v27 = vpop.f32.mrf.mxu3  ;;  %v1102_v41 = vpop.f32.mrf.mxu1 }
 0x14f   : > { %v1018_v22 = vadd.f32 %v1017_v27, %v953_v53  ;;  %v1103_v40 = vadd.f32 %v1102_v41, %v1038_v37  ;;  %v1053_v27 = vadd.f32 %v2442_v24, %v2440_v14 }
 0x150   : > { %v1082_v43 = vpop.f32.mrf.mxu0 }
 0x151   : > { %v2517_v60 = vadd.f32 %v1082_v43, %v1018_v22 }
 0x153   : > { %1341 = vmatmul.f32.gmra.mxu0 %v1628_v52  ;;  %v1167_v23 = vpop.f32.mrf.mxu2 }
 0x154   : > { %v1168_v34 = vadd.f32 %v1167_v23, %v1103_v40  ;;  %v1056_v23 = vadd.f32 %v2451_v50, %v2449_v8 }
 0x156   : > { %v1105_v62 = vpop.f32.mrf.mxu1  ;;  %v1232_v47 = vpop.f32.mrf.mxu3 }
 0x157   : > { %v1233_v61 = vadd.f32 %v1232_v47, %v1168_v34  ;;  %v1106_v5 = vadd.f32 %v1105_v62, %v1041_v30 }
 0x158   : > { %v1297_v19 = vpop.f32.mrf.mxu0 }
 0x159   : > { %v2527_v21 = vadd.f32 %v1297_v19, %v1233_v61 }
 0x15b   : > { %1345 = vst [vmem:[%s2525_s19] sm:$0xff] %v2527_v21  ;;  %v1170_v59 = vpop.f32.mrf.mxu2 }
 0x15c   : > { %v1171_v3 = vadd.f32 %v1170_v59, %v1106_v5  ;;  %v1059_v5 = vadd.f32 %v2461_v18, %v2459_v55 }
 0x15e   : > { %v1108_v46 = vpop.f32.mrf.mxu1  ;;  %v1235_v26 = vpop.f32.mrf.mxu3 }
 0x15f   : > { %v1236_v42 = vadd.f32 %v1235_v26, %v1171_v3  ;;  %v1109_v6 = vadd.f32 %v1108_v46, %v1044_v0 }
 0x160   : > { %v1300_v7 = vpop.f32.mrf.mxu0 }
 0x161   : > { %v2533_v58 = vadd.f32 %v1300_v7, %v1236_v42 }
 0x163   : > { %1346 = vst [vmem:[%s2525_s19 + $0x8] sm:$0xff] %v2533_v58  ;;  %v1173_v29 = vpop.f32.mrf.mxu2 }
 0x164   : > { %v1174_v39 = vadd.f32 %v1173_v29, %v1109_v6 }
 0x166   : > { %v1111_v1 = vpop.f32.mrf.mxu1  ;;  %v1238_v2 = vpop.f32.mrf.mxu3 }
 0x167   : > { %v1239_v57 = vadd.f32 %v1238_v2, %v1174_v39  ;;  %v1112_v4 = vadd.f32 %v1111_v1, %v1047_v20 }
 0x168   : > { %v1303_v56 = vpop.f32.mrf.mxu0 }
 0x169   : > { %v2539_v54 = vadd.f32 %v1303_v56, %v1239_v57 }
 0x16b   : > { %1347 = vst [vmem:[%s2525_s19 + $0x10] sm:$0xff] %v2539_v54  ;;  %v1176_v9 = vpop.f32.mrf.mxu2 }
 0x16c   : > { %v1177_v13 = vadd.f32 %v1176_v9, %v1112_v4 }
 0x16e   : > { %v1114_v17 = vpop.f32.mrf.mxu1  ;;  %v1241_v38 = vpop.f32.mrf.mxu3 }
 0x16f   : > { %v1242_v45 = vadd.f32 %v1241_v38, %v1177_v13  ;;  %v1115_v25 = vadd.f32 %v1114_v17, %v1050_v11 }
 0x170   : > { %v1306_v32 = vpop.f32.mrf.mxu0 }
 0x171   : > { %v2545_v10 = vadd.f32 %v1306_v32, %v1242_v45 }
 0x173   : > { %1348 = vst [vmem:[%s2525_s19 + $0x18] sm:$0xff] %v2545_v10  ;;  %v1179_v16 = vpop.f32.mrf.mxu2 }
 0x174   : > { %v1180_v63 = vadd.f32 %v1179_v16, %v1115_v25 }
 0x176   : > { %v1117_v44 = vpop.f32.mrf.mxu1  ;;  %v1244_v48 = vpop.f32.mrf.mxu3 }
 0x177   : > { %v1245_v53 = vadd.f32 %v1244_v48, %v1180_v63  ;;  %v1118_v37 = vadd.f32 %v1117_v44, %v1053_v27 }
 0x178   : > { %v1309_v41 = vpop.f32.mrf.mxu0 }
 0x179   : > { %v2551_v22 = vadd.f32 %v1309_v41, %v1245_v53 }
 0x17b   : > { %1349 = vst [vmem:[%s2525_s19 + $0x20] sm:$0xff] %v2551_v22  ;;  %v1182_v15 = vpop.f32.mrf.mxu2 }
 0x17c   : > { %v1183_v33 = vadd.f32 %v1182_v15, %v1118_v37 }
 0x17e   : > { %v1120_v43 = vpop.f32.mrf.mxu1  ;;  %v1247_v52 = vpop.f32.mrf.mxu3 }
 0x17f   : > { %v1248_v40 = vadd.f32 %v1247_v52, %v1183_v33  ;;  %v1121_v47 = vadd.f32 %v1120_v43, %v1056_v23 }
 0x180   : > { %v1312_v34 = vpop.f32.mrf.mxu0 }
 0x181   : > { %v2557_v62 = vadd.f32 %v1312_v34, %v1248_v40 }
 0x183   : > { %1350 = vst [vmem:[%s2525_s19 + $0x28] sm:$0xff] %v2557_v62  ;;  %v1185_v14 = vpop.f32.mrf.mxu2 }
 0x184   : > { %v1186_v24 = vadd.f32 %v1185_v14, %v1121_v47 }
 0x186   : > { %v1123_v61 = vpop.f32.mrf.mxu1  ;;  %v1250_v30 = vpop.f32.mrf.mxu3 }
 0x187   : > { %v1251_v19 = vadd.f32 %v1250_v30, %v1186_v24  ;;  %v1124_v46 = vadd.f32 %v1123_v61, %v1059_v5 }
 0x188   : > { %v1315_v59 = vpop.f32.mrf.mxu0 }
 0x189   : > { %v2563_v3 = vadd.f32 %v1315_v59, %v1251_v19 }
 0x18b   : > { %1351 = vst [vmem:[%s2525_s19 + $0x30] sm:$0xff] %v2563_v3  ;;  %v1188_v8 = vpop.f32.mrf.mxu2 }
 0x18c   : > { %v1189_v50 = vadd.f32 %v1188_v8, %v1124_v46 }
 0x18e   : > { %v1126_v26 = vpop.f32.mrf.mxu1  ;;  %v1253_v42 = vpop.f32.mrf.mxu3 }
 0x18f   : > { %v1254_v0 = vadd.f32 %v1253_v42, %v1189_v50  ;;  %v1127_v29 = vadd.f32 %v1126_v26, %v2468_v28  ;;  %v1361_v28 = vadd.f32 %v2533_v58, %v2527_v21 }
 0x190   : > { %v1318_v7 = vpop.f32.mrf.mxu0 }
 0x191   : > { %v2567_v6 = vadd.f32 %v1318_v7, %v1254_v0  ;;  %v1362_v11 = vadd.f32 %v1361_v28, %v2539_v54 }
 0x193   : > { %1352 = vst [vmem:[%s2525_s19 + $0x38] sm:$0xff] %v2567_v6  ;;  %v1191_v55 = vpop.f32.mrf.mxu2 }
 0x194   : > { %v1192_v18 = vadd.f32 %v1191_v55, %v1127_v29 }
 0x196   : > { %v1129_v39 = vpop.f32.mrf.mxu1  ;;  %v1256_v1 = vpop.f32.mrf.mxu3 }
 0x197   : > { %v1257_v2 = vadd.f32 %v1256_v1, %v1192_v18  ;;  %v1130_v56 = vadd.f32 %v1129_v39, %v2475_v31  ;;  %v1363_v31 = vadd.f32 %v1362_v11, %v2545_v10 }
 0x198   : > { %v1321_v57 = vpop.f32.mrf.mxu0 }
 0x199   : > { %v2572_v20 = vadd.f32 %v1321_v57, %v1257_v2  ;;  %v1364_v44 = vadd.f32 %v1363_v31, %v2551_v22 }
 0x19b   : > { %1353 = vst [vmem:[%s2525_s19 + $0x40] sm:$0xff] %v2572_v20  ;;  %v1194_v4 = vpop.f32.mrf.mxu2  ;;  %v1365_v27 = vadd.f32 %v1364_v44, %v2557_v62 }
 0x19c   : > { %v1195_v9 = vadd.f32 %v1194_v4, %v1130_v56 }
 0x19d   : > { %v1366_v15 = vadd.f32 %v1365_v27, %v2563_v3 }
 0x19e   : > { %v1132_v13 = vpop.f32.mrf.mxu1  ;;  %v1259_v17 = vpop.f32.mrf.mxu3 }
 0x19f   : > { %v1260_v38 = vadd.f32 %v1259_v17, %v1195_v9  ;;  %v1133_v25 = vadd.f32 %v1132_v13, %v2482_v49  ;;  %v1367_v43 = vadd.f32 %v1366_v15, %v2567_v6 }
 0x1a0   : > { %v1324_v45 = vpop.f32.mrf.mxu0 }
 0x1a1   : > { %v2580_v32 = vadd.f32 %v1324_v45, %v1260_v38  ;;  %v1368_v23 = vadd.f32 %v1367_v43, %v2572_v20 }
 0x1a3   : > { %1354 = vst [vmem:[%s2525_s19 + $0x48] sm:$0xff] %v2580_v32  ;;  %v1197_v16 = vpop.f32.mrf.mxu2  ;;  %v1369_v14 = vadd.f32 %v1368_v23, %v2580_v32 }
 0x1a4   : > { %v1198_v63 = vadd.f32 %v1197_v16, %v1133_v25 }
 0x1a6   : > { %v1135_v48 = vpop.f32.mrf.mxu1  ;;  %v1262_v53 = vpop.f32.mrf.mxu3 }
 0x1a7   : > { %v1263_v41 = vadd.f32 %v1262_v53, %v1198_v63  ;;  %v1136_v49 = vadd.f32 %v1135_v48, %v2489_v12 }
 0x1a8   : > { %v1327_v37 = vpop.f32.mrf.mxu0 }
 0x1a9   : > { %v2589_v33 = vadd.f32 %v1327_v37, %v1263_v41 }
 0x1ab   : > { %1355 = vst [vmem:[%s2525_s19 + $0x50] sm:$0xff] %v2589_v33  ;;  %v1200_v52 = vpop.f32.mrf.mxu2  ;;  %v1370_v30 = vadd.f32 %v1369_v14, %v2589_v33 }
 0x1ac   : > { %v1201_v40 = vadd.f32 %v1200_v52, %v1136_v49 }
 0x1ae   : > { %v1138_v34 = vpop.f32.mrf.mxu1  ;;  %v1265_v47 = vpop.f32.mrf.mxu3 }
 0x1af   : > { %v1266_v24 = vadd.f32 %v1265_v47, %v1201_v40  ;;  %v1139_v12 = vadd.f32 %v1138_v34, %v2497_v51 }
 0x1b0   : > { %v1330_v61 = vpop.f32.mrf.mxu0 }
 0x1b1   : > { %v1331_v19 = vadd.f32 %v1330_v61, %v1266_v24 }
 0x1b3   : > { %1356 = vst [vmem:[%s2525_s19 + $0x58] sm:$0xff] %v1331_v19  ;;  %v1371_v5 = vadd.f32 %v1370_v30, %v1331_v19  ;;  %v1203_v59 = vpop.f32.mrf.mxu2 }
 0x1b4   : > { %v1204_v46 = vadd.f32 %v1203_v59, %v1139_v12 }
 0x1b6   : > { %v1141_v8 = vpop.f32.mrf.mxu1  ;;  %v1268_v50 = vpop.f32.mrf.mxu3 }
 0x1b7   : > { %v1269_v26 = vadd.f32 %v1268_v50, %v1204_v46  ;;  %v1142_v7 = vadd.f32 %v1141_v8, %v2505_v36 }
 0x1b8   : > { %v1333_v42 = vpop.f32.mrf.mxu0 }
 0x1b9   : > { %v1334_v0 = vadd.f32 %v1333_v42, %v1269_v26 }
 0x1bb   : > { %1357 = vst [vmem:[%s2525_s19 + $0x60] sm:$0xff] %v1334_v0  ;;  %v1372_v29 = vadd.f32 %v1371_v5, %v1334_v0  ;;  %v1206_v55 = vpop.f32.mrf.mxu2 }
 0x1bc   : > { %v1207_v18 = vadd.f32 %v1206_v55, %v1142_v7 }
 0x1be   : > { %v1144_v39 = vpop.f32.mrf.mxu1  ;;  %v1271_v1 = vpop.f32.mrf.mxu3 }
 0x1bf   : > { %v1272_v51 = vadd.f32 %v1271_v1, %v1207_v18  ;;  %v1145_v56 = vadd.f32 %v1144_v39, %v2511_v35 }
 0x1c0   : > { %v1336_v2 = vpop.f32.mrf.mxu0 }
 0x1c1   : > { %v1337_v57 = vadd.f32 %v1336_v2, %v1272_v51 }
 0x1c3   : > { %1358 = vst [vmem:[%s2525_s19 + $0x68] sm:$0xff] %v1337_v57  ;;  %v1373_v4 = vadd.f32 %v1372_v29, %v1337_v57  ;;  %v1209_v9 = vpop.f32.mrf.mxu2 }
 0x1c4   : > { %v1210_v13 = vadd.f32 %v1209_v9, %v1145_v56 }
 0x1c6   : > { %v1274_v17 = vpop.f32.mrf.mxu3  ;;  %v1147_v28 = vpop.f32.mrf.mxu1 }
 0x1c7   : > { %v1275_v36 = vadd.f32 %v1274_v17, %v1210_v13  ;;  %v1148_v11 = vadd.f32 %v1147_v28, %v2517_v60 }
 0x1c8   : > { %v1339_v38 = vpop.f32.mrf.mxu0 }
 0x1c9   : > { %v1340_v45 = vadd.f32 %v1339_v38, %v1275_v36 }
 0x1cb   : > { %1359 = vst [vmem:[%s2525_s19 + $0x70] sm:$0xff] %v1340_v45  ;;  %v1374_v25 = vadd.f32 %v1373_v4, %v1340_v45  ;;  %v1212_v31 = vpop.f32.mrf.mxu2 }
 0x1cc   : > { %v1213_v16 = vadd.f32 %v1212_v31, %v1148_v11 }
 0x1ce   : > { %v1277_v63 = vpop.f32.mrf.mxu3 }
 0x1cf   : > { %v1278_v44 = vadd.f32 %v1277_v63, %v1213_v16 }
 0x1d0   : > { %v1342_v35 = vpop.f32.mrf.mxu0 }
 0x1d1   : > { %v1343_v48 = vadd.f32 %v1342_v35, %v1278_v44 }
 0x1d3   : > { %1360 = vst [vmem:[%s2525_s19 + $0x78] sm:$0xff] %v1343_v48  ;;  %v1375_v53 = vadd.f32 %v1374_v25, %v1343_v48 }
 0x1d5   : > { %v1376_v27 = vrot.slane %v1375_v53, 4 }
 0x1d7   : > { %v1377_v41 = vadd.f32 %v1376_v27, %v1375_v53 }
 0x1d9   : > { %v1378_v37 = vrot.slane %v1377_v41, 2 }
 0x1db   : > { %v1379_v15 = vadd.f32 %v1378_v37, %v1377_v41 }
 0x1dd   : > { %v1380_v49 = vrot.slane %v1379_v15, 1 }
 0x1df   : > { %v1381_v60 = vadd.f32 %v1380_v49, %v1379_v15 }
 0x1e1   : > { %v1382_v43 = vmul.f32 0.0078125, %v1381_v60  ;;  %1436 = vst [vmem:[%s2611_s23] sm:$0x1] %v1381_v60 }
 0x1e3   : > { %v1383_v52 = vsub.f32 %v2527_v21, %v1382_v43  ;;  %v1384_v40 = vsub.f32 %v2533_v58, %v1382_v43  ;;  %v1393_v23 = vsub.f32 %v2589_v33, %v1382_v43  ;;  %v1394_v34 = vsub.f32 %v1331_v19, %v1382_v43 }
 0x1e4   : > { %v1395_v47 = vsub.f32 %v1334_v0, %v1382_v43  ;;  %v1396_v14 = vsub.f32 %v1337_v57, %v1382_v43  ;;  %v1397_v24 = vsub.f32 %v1340_v45, %v1382_v43  ;;  %v1398_v61 = vsub.f32 %v1343_v48, %v1382_v43 }
 0x1e5   : > { %v1385_v30 = vsub.f32 %v2539_v54, %v1382_v43  ;;  %v1399_v12 = vmul.f32 %v1383_v52, %v1383_v52  ;;  %v1400_v5 = vmul.f32 %v1384_v40, %v1384_v40  ;;  %v1386_v59 = vsub.f32 %v2545_v10, %v1382_v43 }
 0x1e6   : > { %v1387_v46 = vsub.f32 %v2551_v22, %v1382_v43  ;;  %v1388_v21 = vsub.f32 %v2557_v62, %v1382_v43  ;;  %v1389_v33 = vsub.f32 %v2563_v3, %v1382_v43  ;;  %v1390_v0 = vsub.f32 %v2567_v6, %v1382_v43 }
 0x1e7   : > { %v1401_v8 = vmul.f32 %v1385_v30, %v1385_v30  ;;  %v1415_v50 = vadd.f32 %v1400_v5, %v1399_v12  ;;  %v1402_v58 = vmul.f32 %v1386_v59, %v1386_v59  ;;  %v1391_v29 = vsub.f32 %v2572_v20, %v1382_v43 }
 0x1e8   : > { %v1403_v19 = vmul.f32 %v1387_v46, %v1387_v46  ;;  %v1404_v7 = vmul.f32 %v1388_v21, %v1388_v21  ;;  %v1405_v55 = vmul.f32 %v1389_v33, %v1389_v33  ;;  %v1392_v22 = vsub.f32 %v2580_v32, %v1382_v43 }
 0x1e9   : > { %v1416_v26 = vadd.f32 %v1415_v50, %v1401_v8  ;;  %v1406_v18 = vmul.f32 %v1390_v0, %v1390_v0  ;;  %v1407_v1 = vmul.f32 %v1391_v29, %v1391_v29  ;;  %v1409_v57 = vmul.f32 %v1393_v23, %v1393_v23 }
 0x1ea   : > { %v1408_v51 = vmul.f32 %v1392_v22, %v1392_v22  ;;  %v1410_v56 = vmul.f32 %v1394_v34, %v1394_v34  ;;  %v1411_v6 = vmul.f32 %v1395_v47, %v1395_v47  ;;  %v1412_v13 = vmul.f32 %v1396_v14, %v1396_v14 }
 0x1eb   : > { %v1417_v42 = vadd.f32 %v1416_v26, %v1402_v58  ;;  %v1413_v20 = vmul.f32 %v1397_v24, %v1397_v24  ;;  %v1414_v36 = vmul.f32 %v1398_v61, %v1398_v61 }
 0x1ed   : > { %v1418_v54 = vadd.f32 %v1417_v42, %v1403_v19 }
 0x1ef   : > { %v1419_v10 = vadd.f32 %v1418_v54, %v1404_v7 }
 0x1f1   : > { %v1420_v39 = vadd.f32 %v1419_v10, %v1405_v55 }
 0x1f3   : > { %v1421_v62 = vadd.f32 %v1420_v39, %v1406_v18 }
 0x1f5   : > { %v1422_v2 = vadd.f32 %v1421_v62, %v1407_v1 }
 0x1f7   : > { %v1423_v3 = vadd.f32 %v1422_v2, %v1408_v51 }
 0x1f9   : > { %v1424_v4 = vadd.f32 %v1423_v3, %v1409_v57 }
 0x1fb   : > { %v1425_v9 = vadd.f32 %v1424_v4, %v1410_v56 }
 0x1fd   : > { %v1426_v17 = vadd.f32 %v1425_v9, %v1411_v6 }
 0x1ff   : > { %v1427_v28 = vadd.f32 %v1426_v17, %v1412_v13 }
 0x201   : > { %v1428_v38 = vadd.f32 %v1427_v28, %v1413_v20 }
 0x203   : > { %v1429_v32 = vadd.f32 %v1428_v38, %v1414_v36 }
 0x205   : > { %v1430_v45 = vrot.slane %v1429_v32, 4 }
 0x207   : > { %v1431_v11 = vadd.f32 %v1430_v45, %v1429_v32 }
 0x209   : > { %v1432_v25 = vrot.slane %v1431_v11, 2 }
 0x20b   : > { %v1433_v31 = vadd.f32 %v1432_v25, %v1431_v11 }
 0x20d   : > { %v1434_v16 = vrot.slane %v1433_v31, 1 }
 0x20f   : > { %v1435_v63 = vadd.f32 %v1434_v16, %v1433_v31 }
 0x211   : > { %1437 = vst [vmem:[%s2611_s23 + $0x1] sm:$0x1] %v1435_v63 }
 0x212 PF: > { %s14_s12 = sadd.s32 1, %s1695_s12  }
 0x213   : > { %p11_p4 = scmp.ge.s32.totalorder %s14_s12, 6  }
 0x215   :  { %13 = sbr.rel (!%p11_p4) target bundleno = 1 (0x1), region = 72 }

</bundles_post_ra>
